<compile_context>
chip_gen: v5e
topology: v5e:2x2
jax: 0.10.0
libtpu: 0.0.40
codegen_flags: <defaults>
</compile_context>

<pallas_src>
import functools

import jax
import jax.numpy as jnp
from jax.experimental import pallas as pl
from jax.experimental.pallas import tpu as pltpu


def find_multiple(n: int, k: int) -> int:
    if n % k == 0:
        return n
    return n + k - n % k


def _pick_tile(total: int, target: int, align: int) -> int:
    """Largest multiple of `align` that divides `total` and is <= target."""
    target = min(target, total)
    start = target - target % align
    for cand in range(start, align - 1, -align):
        if total % cand == 0:
            return cand
    return total


def _ffn_kernel(x_ref, w13_ref, w2_ref, o_ref, acc_ref, *, th):
    # x_ref:   (tm, D)       bf16   row tile (resident across the H axis)
    # w13_ref: (1, D, 2*th)  bf16   fused [w1 | w3] column tile for this H step
    # w2_ref:  (th, D)       bf16   w2 row tile for this H step
    # o_ref:   (tm, D)       out    written once on the last H step
    # acc_ref: (tm, D)       f32    reduction accumulator
    j = pl.program_id(1)

    @pl.when(j == 0)
    def _init():
        acc_ref[...] = jnp.zeros_like(acc_ref)

    x = x_ref[...]  # bf16
    # One fused gate GEMM: (tm, D) @ (D, 2*th) -> (tm, 2*th), f32 accumulation.
    h = jnp.dot(x, w13_ref[0], preferred_element_type=jnp.float32)
    h1 = h[:, :th]
    h3 = h[:, th:]
    # SiLU(h1) * h3 in f32 (VPU + EUP); cast only the matmul operand to bf16.
    g = (h1 * jax.nn.sigmoid(h1)) * h3
    acc_ref[...] += jnp.dot(g.astype(jnp.bfloat16), w2_ref[...],
                            preferred_element_type=jnp.float32)

    @pl.when(j == pl.num_programs(1) - 1)
    def _finalize():
        o_ref[...] = acc_ref[...].astype(o_ref.dtype)


@functools.partial(jax.jit, static_argnames=("tm", "th"))
def feed_forward(x, w1, w3, w2, *, tm=256, th=None):
    """SwiGLU FFN.

    x:  (B, S, D)
    w1: (H, D)  nn.Linear(dim, hidden) weight (out, in)
    w3: (H, D)  nn.Linear(dim, hidden) weight (out, in)
    w2: (D, H)  nn.Linear(hidden, dim) weight (out, in)
    Returns (B, S, D) in x.dtype.
    """
    B, S, D = x.shape
    H = w1.shape[0]

    if th is None:
        th = _pick_tile(H, 2048, 128)
    assert H % th == 0 and (2 * th) % 128 == 0, "bad hidden tile"
    Hn = H // th

    # --- rows: pad M up to a multiple of the (possibly shrunk) row tile ---
    M = B * S
    tm_eff = find_multiple(min(tm, find_multiple(M, 8)), 8)
    M_pad = find_multiple(M, tm_eff)

    x2d = x.reshape(M, D).astype(jnp.bfloat16)
    if M_pad != M:
        x2d = jnp.pad(x2d, ((0, M_pad - M), (0, 0)))

    # --- weights: bf16, pre-transposed; w1/w3 fused per H tile -> (Hn, D, 2*th)
    w1_t = w1.T.astype(jnp.bfloat16)          # (D, H)
    w3_t = w3.T.astype(jnp.bfloat16)          # (D, H)
    w2_t = w2.T.astype(jnp.bfloat16)          # (H, D)
    w1_r = w1_t.reshape(D, Hn, th).transpose(1, 0, 2)   # (Hn, D, th)
    w3_r = w3_t.reshape(D, Hn, th).transpose(1, 0, 2)   # (Hn, D, th)
    w13 = jnp.concatenate([w1_r, w3_r], axis=-1)        # (Hn, D, 2*th)

    grid = (M_pad // tm_eff, Hn)
    out_itemsize = jnp.dtype(x.dtype).itemsize

    # --- VMEM budget (double-buffered inputs/outputs + accumulator scratch) ---
    per_step_bytes = (tm_eff * D * 2          # x tile (bf16)
                      + D * 2 * th * 2        # fused w1/w3 tile (bf16)
                      + th * D * 2            # w2 tile (bf16)
                      + tm_eff * D * out_itemsize)
    vmem_needed = 2 * per_step_bytes + tm_eff * D * 4
    vmem_limit = int(min(64 * 1024 * 1024,
                         max(2 * vmem_needed + (1 << 20), 16 * 1024 * 1024)))

    cost = pl.CostEstimate(
        flops=int(6 * M_pad * D * H),             # 2*M*D*2H + 2*M*H*D
        transcendentals=int(M_pad * H),           # sigmoid
        bytes_accessed=int(M_pad * D * 2          # x (bf16)
                           + 3 * D * H * 2        # w1, w3, w2 (bf16)
                           + M_pad * D * out_itemsize),
    )

    out2d = pl.pallas_call(
        functools.partial(_ffn_kernel, th=th),
        out_shape=jax.ShapeDtypeStruct((M_pad, D), x.dtype),
        grid_spec=pltpu.PrefetchScalarGridSpec(
            num_scalar_prefetch=0,
            grid=grid,
            in_specs=[
                pl.BlockSpec((tm_eff, D), lambda i, j: (i, 0)),      # x rows
                pl.BlockSpec((1, D, 2 * th), lambda i, j: (j, 0, 0)),  # [w1|w3]
                pl.BlockSpec((th, D), lambda i, j: (j, 0)),          # w2 rows
            ],
            out_specs=pl.BlockSpec((tm_eff, D), lambda i, j: (i, 0)),
            scratch_shapes=[pltpu.VMEM((tm_eff, D), jnp.float32)],
        ),
        compiler_params=pltpu.CompilerParams(
            dimension_semantics=("parallel", "arbitrary"),
            vmem_limit_bytes=vmem_limit),
        cost_estimate=cost,
    )(x2d, w13, w2_t)

    return out2d[:M].reshape(B, S, D)


def ffn_reference(x, w1, w3, w2):
    """Precision-matched reference (bf16 operands, f32 accumulation)."""
    xb = x.astype(jnp.bfloat16)
    h1 = jnp.dot(xb, w1.T.astype(jnp.bfloat16), preferred_element_type=jnp.float32)
    h3 = jnp.dot(xb, w3.T.astype(jnp.bfloat16), preferred_element_type=jnp.float32)
    g = (h1 * jax.nn.sigmoid(h1)) * h3
    return jnp.dot(g.astype(jnp.bfloat16), w2.T.astype(jnp.bfloat16),
                   preferred_element_type=jnp.float32).astype(x.dtype)


if __name__ == "__main__":
    # ModelArgs-like small config: dim=128, multiple_of=256 -> hidden_dim=512.
    dim = 128
    multiple_of = 256
    hidden_dim = 4 * dim
    hidden_dim = int(2 * hidden_dim / 3)                  # 341
    hidden_dim = find_multiple(hidden_dim, multiple_of)   # 512

    B, S = 2, 128   # M = 256 -> two 128-row tiles; th=256 -> two H steps

    key = jax.random.PRNGKey(0)
    kx, k1, k2, k3 = jax.random.split(key, 4)
    x = jax.random.normal(kx, (B, S, dim), dtype=jnp.float32)
    # nn.Linear weights are (out_features, in_features).
    w1 = jax.random.normal(k1, (hidden_dim, dim), dtype=jnp.float32) * 0.02
    w3 = jax.random.normal(k3, (hidden_dim, dim), dtype=jnp.float32) * 0.02
    w2 = jax.random.normal(k2, (dim, hidden_dim), dtype=jnp.float32) * 0.02

    out = feed_forward(x, w1, w3, w2, tm=128, th=256)
    out = jax.block_until_ready(out)

    ref = ffn_reference(x, w1, w3, w2)
    assert out.shape == (B, S, dim)
    max_err = float(jnp.max(jnp.abs(out - ref)))
    assert jnp.allclose(out, ref, atol=1e-3, rtol=1e-2), (
        f"mismatch vs reference (max abs err {max_err})")

    print("KERNEL_OK")
</pallas_src>

<mosaic_0001>
module attributes {stable_mosaic.version = 11 : i64} {
  func.func @_ffn_kernel(%arg0: i32, %arg1: i32, %arg2: memref<128x128xbf16, #tpu.memory_space<vmem>>, %arg3: memref<1x128x512xbf16, #tpu.memory_space<vmem>>, %arg4: memref<256x128xbf16, #tpu.memory_space<vmem>>, %arg5: memref<128x128xf32, #tpu.memory_space<vmem>>, %arg6: memref<128x128xf32, #tpu.memory_space<vmem>>) attributes {dimension_semantics = [#tpu.dimension_semantics<parallel>, #tpu.dimension_semantics<arbitrary>], iteration_bounds = array<i64: 2, 2>, scalar_prefetch = 0 : i64, scratch_operands = 1 : i64, tpu.core_type = #tpu.core_type<tc>, window_params = [{transform_indices = @transform_0, window_bounds = array<i64: 128, 128>}, {transform_indices = @transform_1, window_bounds = array<i64: 1, 128, 512>}, {transform_indices = @transform_2, window_bounds = array<i64: 256, 128>}, {transform_indices = @transform_3, window_bounds = array<i64: 128, 128>}]} {
    %c0_i32 = arith.constant 0 : i32
    %0 = arith.cmpi eq, %arg1, %c0_i32 : i32
    %1 = arith.extui %0 : i1 to i32
    %c0_i32_0 = arith.constant 0 : i32
    %2 = arith.cmpi ne, %1, %c0_i32_0 : i32
    scf.if %2 {
      %cst_14 = arith.constant 0.000000e+00 : f32
      %25 = vector.broadcast %cst_14 : f32 to vector<128x128xf32>
      %c0_15 = arith.constant 0 : index
      %c0_16 = arith.constant 0 : index
      %26 = vector.load %arg6[%c0_15, %c0_16] : memref<128x128xf32, #tpu.memory_space<vmem>>, vector<128x128xf32>
      tpu.vector_store %arg6[%c0_15, %c0_16], %25 {strides = array<i32>} : memref<128x128xf32, #tpu.memory_space<vmem>>, vector<128x128xf32>,
    } else {
    }
    %c0 = arith.constant 0 : index
    %c0_1 = arith.constant 0 : index
    %3 = vector.load %arg2[%c0, %c0_1] : memref<128x128xbf16, #tpu.memory_space<vmem>>, vector<128x128xbf16>
    %c0_2 = arith.constant 0 : index
    %c0_3 = arith.constant 0 : index
    %c0_4 = arith.constant 0 : index
    %4 = vector.load %arg3[%c0_2, %c0_3, %c0_4] : memref<1x128x512xbf16, #tpu.memory_space<vmem>>, vector<1x128x512xbf16>
    %5 = vector.shape_cast %4 : vector<1x128x512xbf16> to vector<128x512xbf16>
    %cst = arith.constant dense<0.000000e+00> : vector<128x512xf32>
    %6 = tpu.matmul %3, %5, %cst {dimension_numbers = #tpu.dot_dimension_numbers<[1], [0], [0], [1], [0, 0, 1, 1], [], []>} : vector<128x128xbf16>, vector<128x512xbf16>, vector<128x512xf32> -> vector<128x512xf32>
    %7 = vector.extract_strided_slice %6 {offsets = [0, 0], sizes = [128, 256], strides = [1, 1]} : vector<128x512xf32> to vector<128x256xf32>
    %8 = vector.extract_strided_slice %6 {offsets = [0, 256], sizes = [128, 256], strides = [1, 1]} : vector<128x512xf32> to vector<128x256xf32>
    %9 = arith.negf %7 : vector<128x256xf32>
    %10 = math.exp %9 : vector<128x256xf32>
    %cst_5 = arith.constant 1.000000e+00 : f32
    %11 = vector.broadcast %cst_5 : f32 to vector<128x256xf32>
    %12 = arith.addf %11, %10 : vector<128x256xf32>
    %13 = arith.divf %11, %12 : vector<128x256xf32>
    %14 = arith.mulf %7, %13 : vector<128x256xf32>
    %15 = arith.mulf %14, %8 : vector<128x256xf32>
    %c0_6 = arith.constant 0 : index
    %c0_7 = arith.constant 0 : index
    %16 = vector.load %arg6[%c0_6, %c0_7] : memref<128x128xf32, #tpu.memory_space<vmem>>, vector<128x128xf32>
    %17 = arith.truncf %15 : vector<128x256xf32> to vector<128x256xbf16>
    %c0_8 = arith.constant 0 : index
    %c0_9 = arith.constant 0 : index
    %18 = vector.load %arg4[%c0_8, %c0_9] : memref<256x128xbf16, #tpu.memory_space<vmem>>, vector<256x128xbf16>
    %cst_10 = arith.constant dense<0.000000e+00> : vector<128x128xf32>
    %19 = tpu.matmul %17, %18, %cst_10 {dimension_numbers = #tpu.dot_dimension_numbers<[1], [0], [0], [1], [0, 0, 1, 1], [], []>} : vector<128x256xbf16>, vector<256x128xbf16>, vector<128x128xf32> -> vector<128x128xf32>
    %20 = arith.addf %16, %19 : vector<128x128xf32>
    %c0_11 = arith.constant 0 : index
    %c0_12 = arith.constant 0 : index
    %21 = vector.load %arg6[%c0_11, %c0_12] : memref<128x128xf32, #tpu.memory_space<vmem>>, vector<128x128xf32>
    tpu.vector_store %arg6[%c0_11, %c0_12], %20 {strides = array<i32>} : memref<128x128xf32, #tpu.memory_space<vmem>>, vector<128x128xf32>,
    %c1_i32 = arith.constant 1 : i32
    %22 = arith.cmpi eq, %arg1, %c1_i32 : i32
    %23 = arith.extui %22 : i1 to i32
    %c0_i32_13 = arith.constant 0 : i32
    %24 = arith.cmpi ne, %23, %c0_i32_13 : i32
    scf.if %24 {
      %c0_14 = arith.constant 0 : index
      %c0_15 = arith.constant 0 : index
      %25 = vector.load %arg6[%c0_14, %c0_15] : memref<128x128xf32, #tpu.memory_space<vmem>>, vector<128x128xf32>
      %c0_16 = arith.constant 0 : index
      %c0_17 = arith.constant 0 : index
      %26 = vector.load %arg5[%c0_16, %c0_17] : memref<128x128xf32, #tpu.memory_space<vmem>>, vector<128x128xf32>
      tpu.vector_store %arg5[%c0_16, %c0_17], %25 {strides = array<i32>} : memref<128x128xf32, #tpu.memory_space<vmem>>, vector<128x128xf32>,
    } else {
    }
    return
  }
  func.func @transform_0(%arg0: i32, %arg1: i32) -> (i32, i32) {
    %c0_i32 = arith.constant 0 : i32
    %c0_i32_0 = arith.constant 0 : i32
    return %arg0, %c0_i32 : i32, i32
  }
  func.func @transform_1(%arg0: i32, %arg1: i32) -> (i32, i32, i32) {
    %c0_i32 = arith.constant 0 : i32
    %c0_i32_0 = arith.constant 0 : i32
    %c0_i32_1 = arith.constant 0 : i32
    return %arg1, %c0_i32, %c0_i32_0 : i32, i32, i32
  }
  func.func @transform_2(%arg0: i32, %arg1: i32) -> (i32, i32) {
    %c0_i32 = arith.constant 0 : i32
    %c0_i32_0 = arith.constant 0 : i32
    return %arg1, %c0_i32 : i32, i32
  }
  func.func @transform_3(%arg0: i32, %arg1: i32) -> (i32, i32) {
    %c0_i32 = arith.constant 0 : i32
    %c0_i32_0 = arith.constant 0 : i32
    return %arg0, %c0_i32 : i32, i32
  }
}

</mosaic_0001>

<bundles_post_ra>
// kernel: feed_forward.1
= control target key start
LH: loop header
LB: loop body
LE: loop exit
PB: predicated region body
PF: predicated region fallthrough
CT: control target
= control target key end

     0   :  { %8 = vsyncpa [#allocation4], 0  ;;  %s3891_s0 = inlined_call_operand.vmem [shape: bf16[256,128], index: 0, kind: input, shape index: {}]   ;;  %s3892_s1 = inlined_call_operand.vmem [shape: bf16[2,128,512], index: 1, kind: input, shape index: {}]   ;;  %s3893_s2 = inlined_call_operand.vmem [shape: bf16[512,128], index: 2, kind: input, shape index: {}]   ;;  %s3894_s3 = inlined_call_operand.hbm [shape: f32[256,128], index: 3, kind: output, shape index: {}]  }
   0x1   :  { %10 = vsyncpa [#allocation4 + $0x1], 0  ;;  %s2479_s12 = smov 0   ;;  %s2481_s13 = smov 0  }
   0x2   :  { %s2483_s14 = smov 0   ;;  %s2485_s15 = smov 0  }
   0x3   :  { %s2487_s16 = smov 0   ;;  %s2489_s17 = smov 0  }
   0x4   :  { %s2491_s18 = smov 0   ;;  %s2493_s19 = smov 0  }
   0x5 LB: > { %s1809_s20 = sadd.s32 4294967295, %s2454_s19   ;;  %s1810_s21 = sadd.s32 4294967294, %s2454_s19   ;;  %s2454_s19 = sphi %s2493_s19, %s16_s19   ;;  %s2450_s18 = sphi %s2491_s18, %s4079_s18   ;;  %s2446_s17 = sphi %s2489_s17, %s4078_s17   ;;  %s2442_s16 = sphi %s2487_s16, %s4077_s16   ;;  %s2438_s15 = sphi %s2485_s15, %s4076_s15   ;;  %s2434_s14 = sphi %s2483_s14, %s4075_s14   ;;  %s2430_s13 = sphi %s2481_s13, %s4074_s13   ;;  %s2426_s12 = sphi %s2479_s12, %s4073_s12  }
   0x6   : > { %s25_s22 = sadd.s32 1, %s2446_s17  ;;  %s28_s23 = sadd.s32 1, %s2450_s18 }
   0x7   : > { %p26_p0 = scmp.ge.s32.totalorder %s25_s22, 2  ;;  %p123_p1 = scmp.ne.s32.totalorder %s2434_s14, %s2430_s13 }
   0x8   : > { %p124_p2 = scmp.eq.s32.totalorder %s1809_s20, 3  ;;  %p129_p4 = scmp.ne.s32.totalorder %s2430_s13, %s2426_s12 }
   0x9   : > { %s4081_s22 = smov (%p26_p0, %s25_s22), 0  ;;  %s4083_s23 = smov (!%p26_p0, %s28_s23), %s2450_s18 }
   0xa   : > { %3916 = sst [smem:[#allocation6_spill]] %s4081_s22  ;;  %p2528_p3 = por %p124_p2, %p123_p1 }
   0xb   : > { %p30_p5 = scmp.ge.s32.totalorder %s4083_s23, 2  ;;  %p130_p6 = scmp.eq.s32.totalorder %s1810_s21, 3 }
   0xc   : > { %p1813_p7 = scmp.ge.s32.totalorder %s2454_s19, 1  ;;  %p174_p8 = scmp.lt.s32.totalorder %s2454_s19, 5 }
   0xd   : > { %s4085_s23 = smov (%p30_p5, %s4083_s23), 0  ;;  %p2538_p9 = por %p130_p6, %p129_p4 }
   0xe   : > { %3918 = sst [smem:[#allocation7_spill]] %s4085_s23  ;;  %p175_p10 = pnand %p1813_p7, %p174_p8 }
   0xf   : > { %s110_s26 = ssub.s32 %s2450_s18, %s4085_s23  ;;  %s113_s27 = sadd.s32 1, %s2434_s14 }
  0x10   : > { %p111_p11 = scmp.eq.s32.totalorder %s110_s26, 0  ;;  %178 = sbr.rel (%p175_p10) target bundleno = 592 (0x250), region = 32 }
  0x12   : > { %s2546_s28 = scalar_select %p111_p11, %s2434_s14, %s113_s27  }
  0x15   : > { %s3895_s29 = sand.u32 1, %s2430_s13   ;;  %s1815_s30 = sshll.u32 %s2442_s16, 4 }
  0x16   : > { %s1814_s4 = sshll.u32 %s3895_s29, 7  ;;  %p209_p12 = scmp.lt.s32.totalorder %s1815_s30, 31 }
  0x17   : > { %p214_p13 = scmp.lt.s32.totalorder %s2438_s15, 1  ;;  %s1819_s7 = sshll.u32 %s2438_s15, 5 }
  0x18   : > { %s4087_s30 = smov (!%p209_p12, %s1815_s30), 31  ;;  %p220_p0 = scmp.lt.s32.totalorder %s1819_s7, 63 }
  0x19   : > { %s215_s5 = scalar_select %p214_p13, %s2438_s15, 1 }
  0x1a   : > { %s1816_s6 = sshll.u32 %s4087_s30, 2  ;;  %s4089_s7 = smov (!%p220_p0, %s1819_s7), 63 }
  0x1b   : > { %s2558_s10 = scalar_lea.vmem %s3891_s0, %s1816_s6  ;;  %s2084_s11 = sshll.u32 %s215_s5, 8 }
  0x1c   : > { %s2563_s26 = scalar_lea.vmem %s3892_s1, %s2084_s11  ;;  %s1820_s27 = sshll.u32 %s4089_s7, 2 }
  0x1d   : > { %s2568_s22 = scalar_lea.vmem %s3893_s2, %s1820_s27  ;;  %s2570_s30 = scalar_lea.vmem [#allocation3], %s1814_s4 }
  0x1e   : > { %p1821_p1 = scmp.ne.s32.totalorder %s2438_s15, 0 }
  0x20   : > { %229 = sbr.rel (%p1821_p1) target bundleno = 54 (0x36), region = 36 }
  0x25   : > { %v2456_v0 = vmov 0.0  }
  0x26   : > { %230 = vst [vmem:[#allocation2 + $0x30] sm:$0xff] %v2456_v0 }
  0x27   : > { %231 = vst [vmem:[#allocation2] sm:$0xff] %v2456_v0 }
  0x28   : > { %232 = vst [vmem:[#allocation2 + $0x58] sm:$0xff] %v2456_v0 }
  0x29   : > { %233 = vst [vmem:[#allocation2 + $0x18] sm:$0xff] %v2456_v0 }
  0x2a   : > { %234 = vst [vmem:[#allocation2 + $0x50] sm:$0xff] %v2456_v0 }
  0x2b   : > { %235 = vst [vmem:[#allocation2 + $0x68] sm:$0xff] %v2456_v0 }
  0x2c   : > { %236 = vst [vmem:[#allocation2 + $0x8] sm:$0xff] %v2456_v0 }
  0x2d   : > { %237 = vst [vmem:[#allocation2 + $0x48] sm:$0xff] %v2456_v0 }
  0x2e   : > { %238 = vst [vmem:[#allocation2 + $0x40] sm:$0xff] %v2456_v0 }
  0x2f   : > { %239 = vst [vmem:[#allocation2 + $0x20] sm:$0xff] %v2456_v0 }
  0x30   : > { %240 = vst [vmem:[#allocation2 + $0x10] sm:$0xff] %v2456_v0 }
  0x31   : > { %241 = vst [vmem:[#allocation2 + $0x38] sm:$0xff] %v2456_v0 }
  0x32   : > { %242 = vst [vmem:[#allocation2 + $0x60] sm:$0xff] %v2456_v0 }
  0x33   : > { %243 = vst [vmem:[#allocation2 + $0x70] sm:$0xff] %v2456_v0 }
  0x34   : > { %244 = vst [vmem:[#allocation2 + $0x78] sm:$0xff] %v2456_v0 }
  0x35   : > { %245 = vst [vmem:[#allocation2 + $0x28] sm:$0xff] %v2456_v0 }
  0x36 PF: > { %v1968_v1 = vld [vmem:[%s2563_s26 + $0xe0] sm:$0xf]  ;;  %v2123_v2 = vld [vmem:[%s2563_s26 + $0xec] sm:$0xf0]  ;;  %v2121_v3 = vld [vmem:[%s2563_s26 + $0xe4] sm:$0xf] }
  0x37   : > { %v1969_v4 = vor.u32 %v2123_v2, %v1968_v1  ;;  %v1970_v5 = vld [vmem:[%s2563_s26 + $0xf0] sm:$0xf0]  ;;  %v1952_v6 = vld [vmem:[%s2563_s26 + $0xc0] sm:$0xf]  ;;  %v2119_v7 = vld [vmem:[%s2563_s26 + $0xcc] sm:$0xf0] }
  0x38   : > { %v1973_v8 = vor.u32 %v2121_v3, %v1970_v5  ;;  %v2117_v9 = vld [vmem:[%s2563_s26 + $0xc4] sm:$0xf]  ;;  %v1954_v10 = vld [vmem:[%s2563_s26 + $0xd0] sm:$0xf0]  ;;  %v1953_v11 = vor.u32 %v2119_v7, %v1952_v6  ;;  %v1936_v13 = vld [vmem:[%s2563_s26 + $0xa0] sm:$0xf] }
  0x39   : > { %2142 = vmatpush.bf16.msra.mxu2 %v1969_v4  ;;  %502 = vmatpush.bf16.msra.mxu0 %v1969_v4  ;;  %v1957_v12 = vor.u32 %v2117_v9, %v1954_v10  ;;  %v2115_v14 = vld [vmem:[%s2563_s26 + $0xac] sm:$0xf0]  ;;  %v2113_v15 = vld [vmem:[%s2563_s26 + $0xa4] sm:$0xf]  ;;  %v1938_v16 = vld [vmem:[%s2563_s26 + $0xb0] sm:$0xf0] }
  0x3a   : > { %2150 = vmatpush.bf16.msra.mxu3 %v1973_v8  ;;  %551 = vmatpush.bf16.msra.mxu1 %v1973_v8  ;;  %v1937_v17 = vor.u32 %v2115_v14, %v1936_v13  ;;  %v1941_v18 = vor.u32 %v2113_v15, %v1938_v16  ;;  %v1920_v19 = vld [vmem:[%s2563_s26 + $0x80] sm:$0xf]  ;;  %v2111_v20 = vld [vmem:[%s2563_s26 + $0x8c] sm:$0xf0]  ;;  %v2109_v21 = vld [vmem:[%s2563_s26 + $0x84] sm:$0xf] }
  0x3b   : > { %v1922_v22 = vld [vmem:[%s2563_s26 + $0x90] sm:$0xf0]  ;;  %v1921_v23 = vor.u32 %v2111_v20, %v1920_v19  ;;  %v1904_v25 = vld [vmem:[%s2563_s26 + $0x60] sm:$0xf]  ;;  %v2107_v26 = vld [vmem:[%s2563_s26 + $0x6c] sm:$0xf0] }
  0x3c   : > { %v1925_v24 = vor.u32 %v2109_v21, %v1922_v22  ;;  %v2105_v27 = vld [vmem:[%s2563_s26 + $0x64] sm:$0xf]  ;;  %v1906_v28 = vld [vmem:[%s2563_s26 + $0x70] sm:$0xf0]  ;;  %v1905_v29 = vor.u32 %v2107_v26, %v1904_v25  ;;  %v1888_v31 = vld [vmem:[%s2563_s26 + $0x40] sm:$0xf] }
  0x3d   : > { %2143 = vmatpush.bf16.msra.mxu2 %v1953_v11  ;;  %503 = vmatpush.bf16.msra.mxu0 %v1953_v11  ;;  %v1909_v30 = vor.u32 %v2105_v27, %v1906_v28  ;;  %v2103_v32 = vld [vmem:[%s2563_s26 + $0x4c] sm:$0xf0]  ;;  %v2101_v33 = vld [vmem:[%s2563_s26 + $0x44] sm:$0xf]  ;;  %v1890_v34 = vld [vmem:[%s2563_s26 + $0x50] sm:$0xf0] }
  0x3e   : > { %2151 = vmatpush.bf16.msra.mxu3 %v1957_v12  ;;  %552 = vmatpush.bf16.msra.mxu1 %v1957_v12  ;;  %v1889_v35 = vor.u32 %v2103_v32, %v1888_v31  ;;  %v1893_v36 = vor.u32 %v2101_v33, %v1890_v34  ;;  %v1872_v37 = vld [vmem:[%s2563_s26 + $0x20] sm:$0xf]  ;;  %v2099_v38 = vld [vmem:[%s2563_s26 + $0x2c] sm:$0xf0]  ;;  %v2097_v39 = vld [vmem:[%s2563_s26 + $0x24] sm:$0xf] }
  0x3f   : > { %v1874_v40 = vld [vmem:[%s2563_s26 + $0x30] sm:$0xf0]  ;;  %v1873_v41 = vor.u32 %v2099_v38, %v1872_v37  ;;  %v1856_v43 = vld [vmem:[%s2563_s26] sm:$0xf]  ;;  %v2095_v44 = vld [vmem:[%s2563_s26 + $0xc] sm:$0xf0] }
  0x40   : > { %v1877_v42 = vor.u32 %v2097_v39, %v1874_v40  ;;  %v2093_v45 = vld [vmem:[%s2563_s26 + $0x4] sm:$0xf]  ;;  %v1858_v46 = vld [vmem:[%s2563_s26 + $0x10] sm:$0xf0]  ;;  %v1976_v47 = vld [vmem:[%s2563_s26 + $0xe8] sm:$0xf]  ;;  %v1857_v51 = vor.u32 %v2095_v44, %v1856_v43 }
  0x41   : > { %2144 = vmatpush.bf16.msra.mxu2 %v1937_v17  ;;  %504 = vmatpush.bf16.msra.mxu0 %v1937_v17  ;;  %v2124_v48 = vld [vmem:[%s2563_s26 + $0xf4] sm:$0xf0]  ;;  %v2122_v49 = vld [vmem:[%s2563_s26 + $0xec] sm:$0xf]  ;;  %v1978_v50 = vld [vmem:[%s2563_s26 + $0xf8] sm:$0xf0]  ;;  %v1861_v52 = vor.u32 %v2093_v45, %v1858_v46 }
  0x42   : > { %2152 = vmatpush.bf16.msra.mxu3 %v1941_v18  ;;  %553 = vmatpush.bf16.msra.mxu1 %v1941_v18  ;;  %v1977_v53 = vor.u32 %v2124_v48, %v1976_v47  ;;  %v2610_v54 = vld [vmem:[%s2558_s10 + $0x20] sm:$0xff]  ;;  %v1981_v55 = vor.u32 %v2122_v49, %v1978_v50  ;;  %v1960_v56 = vld [vmem:[%s2563_s26 + $0xc8] sm:$0xf]  ;;  %v2120_v57 = vld [vmem:[%s2563_s26 + $0xd4] sm:$0xf0]  ;;  %p2078_p2 = scmp.ne.s32.totalorder %s2438_s15, 1 }
  0x43   : > { %v2615_v58 = vld [vmem:[%s2558_s10] sm:$0xff]  ;;  %v2118_v59 = vld [vmem:[%s2563_s26 + $0xcc] sm:$0xf]  ;;  %v1962_v60 = vld [vmem:[%s2563_s26 + $0xd8] sm:$0xf0]  ;;  %v1961_v61 = vor.u32 %v2120_v57, %v1960_v56 }
  0x44   : > { %v1965_v62 = vor.u32 %v2118_v59, %v1962_v60  ;;  %v1944_v63 = vld [vmem:[%s2563_s26 + $0xa8] sm:$0xf]  ;;  %v2116_v0 = vld [vmem:[%s2563_s26 + $0xb4] sm:$0xf0]  ;;  %v2114_v1 = vld [vmem:[%s2563_s26 + $0xac] sm:$0xf] }
  0x45   : > { %2145 = vmatpush.bf16.msra.mxu2 %v1921_v23  ;;  %505 = vmatpush.bf16.msra.mxu0 %v1921_v23  ;;  %v1946_v2 = vld [vmem:[%s2563_s26 + $0xb8] sm:$0xf0]  ;;  %v1945_v3 = vor.u32 %v2116_v0, %v1944_v63  ;;  %v1928_v5 = vld [vmem:[%s2563_s26 + $0x88] sm:$0xf]  ;;  %v2112_v6 = vld [vmem:[%s2563_s26 + $0x94] sm:$0xf0] }
  0x46   : > { %2153 = vmatpush.bf16.msra.mxu3 %v1925_v24  ;;  %554 = vmatpush.bf16.msra.mxu1 %v1925_v24  ;;  %v1949_v4 = vor.u32 %v2114_v1, %v1946_v2  ;;  %v2110_v7 = vld [vmem:[%s2563_s26 + $0x8c] sm:$0xf]  ;;  %v1930_v8 = vld [vmem:[%s2563_s26 + $0x98] sm:$0xf0]  ;;  %v1929_v9 = vor.u32 %v2112_v6, %v1928_v5  ;;  %v1912_v11 = vld [vmem:[%s2563_s26 + $0x68] sm:$0xf] }
  0x47   : > { %v1933_v10 = vor.u32 %v2110_v7, %v1930_v8  ;;  %v2108_v12 = vld [vmem:[%s2563_s26 + $0x74] sm:$0xf0]  ;;  %v2106_v13 = vld [vmem:[%s2563_s26 + $0x6c] sm:$0xf]  ;;  %v1914_v14 = vld [vmem:[%s2563_s26 + $0x78] sm:$0xf0] }
  0x48   : > { %v1913_v15 = vor.u32 %v2108_v12, %v1912_v11  ;;  %v2090_v16 = vld [vmem:[%s2558_s10 + $0x28] sm:$0xff]  ;;  %v1917_v17 = vor.u32 %v2106_v13, %v1914_v14  ;;  %v2104_v19 = vld [vmem:[%s2563_s26 + $0x54] sm:$0xf0]  ;;  %v1898_v22 = vld [vmem:[%s2563_s26 + $0x58] sm:$0xf0] }
  0x49   : > { %2146 = vmatpush.bf16.msra.mxu2 %v1905_v29  ;;  %506 = vmatpush.bf16.msra.mxu0 %v1905_v29  ;;  %v1896_v18 = vld [vmem:[%s2563_s26 + $0x48] sm:$0xf]  ;;  %v2102_v21 = vld [vmem:[%s2563_s26 + $0x4c] sm:$0xf]  ;;  %v2100_v26 = vld [vmem:[%s2563_s26 + $0x34] sm:$0xf0] }
  0x4a   : > { %2154 = vmatpush.bf16.msra.mxu3 %v1909_v30  ;;  %555 = vmatpush.bf16.msra.mxu1 %v1909_v30  ;;  %v2086_v20 = vld [vmem:[%s2558_s10 + $0x8] sm:$0xff]  ;;  %v1897_v23 = vor.u32 %v2104_v19, %v1896_v18  ;;  %v1901_v24 = vor.u32 %v2102_v21, %v1898_v22  ;;  %v1882_v29 = vld [vmem:[%s2563_s26 + $0x38] sm:$0xf0]  ;;  %v2096_v32 = vld [vmem:[%s2563_s26 + $0x14] sm:$0xf0] }
  0x4b   : > { %v1880_v25 = vld [vmem:[%s2563_s26 + $0x28] sm:$0xf]  ;;  %v2098_v27 = vld [vmem:[%s2563_s26 + $0x2c] sm:$0xf]  ;;  %v1866_v34 = vld [vmem:[%s2563_s26 + $0x18] sm:$0xf0] }
  0x4c   : > { %v1881_v28 = vor.u32 %v2100_v26, %v1880_v25  ;;  %v1885_v30 = vor.u32 %v2098_v27, %v1882_v29  ;;  %v1864_v31 = vld [vmem:[%s2563_s26 + $0x8] sm:$0xf]  ;;  %v2094_v33 = vld [vmem:[%s2563_s26 + $0xc] sm:$0xf]  ;;  %v2091_v37 = vld [vmem:[%s2558_s10 + $0x30] sm:$0xff] }
  0x4d   : > { %2147 = vmatpush.bf16.msra.mxu2 %v1889_v35  ;;  %507 = vmatpush.bf16.msra.mxu0 %v1889_v35  ;;  %v1865_v35 = vor.u32 %v2096_v32, %v1864_v31  ;;  %v2087_v38 = vld [vmem:[%s2558_s10 + $0x10] sm:$0xff]  ;;  %v2092_v39 = vld [vmem:[%s2558_s10 + $0x38] sm:$0xff]  ;;  %v2138_v56 = vld [vmem:[%s2568_s22 + $0x68] sm:$0xff] }
  0x4e   : > { %2155 = vmatpush.bf16.msra.mxu3 %v1893_v36  ;;  %556 = vmatpush.bf16.msra.mxu1 %v1893_v36  ;;  %v1869_v36 = vor.u32 %v2094_v33, %v1866_v34  ;;  %v2088_v40 = vld [vmem:[%s2558_s10 + $0x18] sm:$0xff]  ;;  %v2131_v45 = vld [vmem:[%s2568_s22 + $0x30] sm:$0xff]  ;;  %v2129_v2 = vld [vmem:[%s2568_s22 + $0x20] sm:$0xff] }
  0x4f   : > { %v2139_v46 = vld [vmem:[%s2568_s22 + $0x70] sm:$0xff] }
  0x51   : > { %2148 = vmatpush.bf16.msra.mxu2 %v1873_v41  ;;  %508 = vmatpush.bf16.msra.mxu0 %v1873_v41  ;;  %v2132_v41 = vld [vmem:[%s2568_s22 + $0x38] sm:$0xff] }
  0x52   : > { %2156 = vmatpush.bf16.msra.mxu3 %v1877_v42  ;;  %557 = vmatpush.bf16.msra.mxu1 %v1877_v42  ;;  %v2140_v42 = vld [vmem:[%s2568_s22 + $0x78] sm:$0xff] }
  0x55   : > { %2149 = vmatpush.bf16.msra.mxu2 %v1857_v51  ;;  %509 = vmatpush.bf16.msra.mxu0 %v1857_v51 }
  0x56   : > { %2157 = vmatpush.bf16.msra.mxu3 %v1861_v52  ;;  %558 = vmatpush.bf16.msra.mxu1 %v1861_v52 }
  0x58   : > { %530 = vmatmul.bf16.vlgmr.msra.gmra.mxu2 %v2610_v54  ;;  %510 = vmatmul.bf16.vlgmr.msra.gmra.mxu0 %v2615_v58 }
  0x59   : > { %600 = vmatpush.bf16.msrb.mxu2 %v1977_v53  ;;  %579 = vmatmul.bf16.vlgmr.msra.gmra.mxu3 %v2610_v54 }
  0x5a   : > { %649 = vmatpush.bf16.msrb.mxu3 %v1981_v55  ;;  %559 = vmatmul.bf16.vlgmr.msra.gmra.mxu1 %v2615_v58  ;;  %v2130_v55 = vld [vmem:[%s2568_s22 + $0x28] sm:$0xff] }
  0x5b   : > { %1530 = vmatpush.bf16.msrb.mxu0 %v2132_v41  ;;  %1579 = vmatpush.bf16.msrb.mxu1 %v2140_v42 }
  0x5d   : > { %601 = vmatpush.bf16.msrb.mxu2 %v1961_v61 }
  0x5e   : > { %650 = vmatpush.bf16.msrb.mxu3 %v1965_v62 }
  0x5f   : > { %1531 = vmatpush.bf16.msrb.mxu0 %v2131_v45  ;;  %1580 = vmatpush.bf16.msrb.mxu1 %v2139_v46 }
  0x61   : > { %602 = vmatpush.bf16.msrb.mxu2 %v1945_v3  ;;  %v2137_v3 = vld [vmem:[%s2568_s22 + $0x60] sm:$0xff] }
  0x62   : > { %651 = vmatpush.bf16.msrb.mxu3 %v1949_v4 }
  0x63   : > { %1532 = vmatpush.bf16.msrb.mxu0 %v2130_v55  ;;  %1581 = vmatpush.bf16.msrb.mxu1 %v2138_v56 }
  0x65   : > { %603 = vmatpush.bf16.msrb.mxu2 %v1929_v9 }
  0x66   : > { %652 = vmatpush.bf16.msrb.mxu3 %v1933_v10 }
  0x67   : > { %1533 = vmatpush.bf16.msrb.mxu0 %v2129_v2  ;;  %1582 = vmatpush.bf16.msrb.mxu1 %v2137_v3 }
  0x68   : > { %535 = vmatmul.bf16.gmra.mxu2 %v2090_v16  ;;  %515 = vmatmul.bf16.gmra.mxu0 %v2086_v20 }
  0x69   : > { %604 = vmatpush.bf16.msrb.mxu2 %v1913_v15  ;;  %584 = vmatmul.bf16.gmra.mxu3 %v2090_v16 }
  0x6a   : > { %653 = vmatpush.bf16.msrb.mxu3 %v1917_v17  ;;  %564 = vmatmul.bf16.gmra.mxu1 %v2086_v20 }
  0x6d   : > { %605 = vmatpush.bf16.msrb.mxu2 %v1897_v23  ;;  %v2128_v23 = vld [vmem:[%s2568_s22 + $0x18] sm:$0xff] }
  0x6e   : > { %654 = vmatpush.bf16.msrb.mxu3 %v1901_v24  ;;  %v2136_v24 = vld [vmem:[%s2568_s22 + $0x58] sm:$0xff]  ;;  %1534 = vmatpush.bf16.msrb.mxu0 %v2128_v23 }
  0x6f   : > { %1583 = vmatpush.bf16.msrb.mxu1 %v2136_v24  ;;  %v2127_v24 = vld [vmem:[%s2568_s22 + $0x10] sm:$0xff] }
  0x71   : > { %606 = vmatpush.bf16.msrb.mxu2 %v1881_v28 }
  0x72   : > { %655 = vmatpush.bf16.msrb.mxu3 %v1885_v30  ;;  %1535 = vmatpush.bf16.msrb.mxu0 %v2127_v24 }
  0x75   : > { %607 = vmatpush.bf16.msrb.mxu2 %v1865_v35 }
  0x76   : > { %656 = vmatpush.bf16.msrb.mxu3 %v1869_v36 }
  0x78   : > { %540 = vmatmul.bf16.gmra.mxu2 %v2091_v37  ;;  %520 = vmatmul.bf16.gmra.mxu0 %v2087_v38 }
  0x79   : > { %589 = vmatmul.bf16.gmra.mxu3 %v2091_v37 }
  0x7a   : > { %569 = vmatmul.bf16.gmra.mxu1 %v2087_v38 }
  0x88   : > { %545 = vmatmul.bf16.gmra.mxu2 %v2092_v39  ;;  %525 = vmatmul.bf16.gmra.mxu0 %v2088_v40 }
  0x89   : > { %594 = vmatmul.bf16.gmra.mxu3 %v2092_v39 }
  0x8a   : > { %574 = vmatmul.bf16.gmra.mxu1 %v2088_v40 }
  0x98   : > { %608 = vmatmul.bf16.vlgmr.msrb.gmra.mxu2 %v2615_v58 }
  0x99   : > { %657 = vmatmul.bf16.vlgmr.msrb.gmra.mxu3 %v2615_v58 }
  0xa8   : > { %613 = vmatmul.bf16.gmra.mxu2 %v2086_v20 }
  0xa9   : > { %662 = vmatmul.bf16.gmra.mxu3 %v2086_v20 }
  0xb8   : > { %618 = vmatmul.bf16.gmra.mxu2 %v2087_v38 }
  0xb9   : > { %667 = vmatmul.bf16.gmra.mxu3 %v2087_v38 }
  0xc8   : > { %623 = vmatmul.bf16.gmra.mxu2 %v2088_v40 }
  0xc9   : > { %672 = vmatmul.bf16.gmra.mxu3 %v2088_v40 }
  0xd5   : > { %v2673_v51 = vpop.f32.mrf.mxu0 }
  0xd6   : > { %v1982_v53 = vmul.f32 -1.442695, %v2673_v51 }
  0xd7   : > { %v2675_v52 = vpop.f32.mrf.mxu1 }
  0xd8   : > { %628 = vmatmul.bf16.gmra.mxu2 %v2610_v54  ;;  %2232 = vpow2.f32 %v1982_v53 }
  0xd9   : > { %677 = vmatmul.bf16.gmra.mxu3 %v2610_v54  ;;  %v1983_v54 = vmul.f32 -1.442695, %v2675_v52 }
  0xdb   : > { %v2659_v43 = vpop.f32.mrf.mxu2  ;;  %2234 = vpow2.f32 %v1983_v54 }
  0xdc   : > { %v2661_v44 = vpop.f32.mrf.mxu3  ;;  %v1998_v59 = vmul.f32 -1.442695, %v2659_v43 }
  0xdd   : > { %v2686_v60 = vpop.f32.mrf.mxu0  ;;  %v1999_v62 = vmul.f32 -1.442695, %v2661_v44 }
  0xde   : > { %2236 = vpow2.f32 %v1998_v59  ;;  %v2233_v63 = vpop.eup %2232  ;;  %v1984_v0 = vmul.f32 -1.442695, %v2686_v60 }
  0xdf   : > { %v2688_v61 = vpop.f32.mrf.mxu1  ;;  %v2695_v5 = vadd.f32 1.0, %v2233_v63  ;;  %2238 = vpow2.f32 %v1999_v62 }
  0xe0   : > { %v1985_v1 = vmul.f32 -1.442695, %v2688_v61  ;;  %2240 = vpow2.f32 %v1984_v0 }
  0xe1   : > { %v2235_v4 = vpop.eup %2234  ;;  %v837_v29 = vand.u32 2147483648, %v2695_v5  ;;  %v835_v33 = vand.u32 2147483647, %v2695_v5  ;;  %vm831_vm0 = vweird.f32 %v2695_v5 }
  0xe2   : > { %2242 = vpow2.f32 %v1985_v1  ;;  %v2701_v9 = vadd.f32 1.0, %v2235_v4 }
  0xe3   : > { %v2665_v47 = vpop.f32.mrf.mxu2  ;;  %2244 = vrcp.f32 %v2695_v5  ;;  %v2753_v40 = vor.u32 1.1754944e-38, %v837_v29  ;;  %vm2768_vm2 = vcmp.eq.f32.partialorder %v835_v33, 8.507059e+37 }
  0xe4   : > { %v2667_v48 = vpop.f32.mrf.mxu3  ;;  %v2237_v8 = vpop.eup %2236  ;;  %v2000_v10 = vmul.f32 -1.442695, %v2665_v47  ;;  %2246 = vrcp.f32 %v2701_v9  ;;  %v852_v38 = vand.u32 2147483648, %v2701_v9  ;;  %vm846_vm1 = vweird.f32 %v2701_v9 }
  0xe5   : > { %3920 = vst [vmem:[#allocation8_spill] sm:$0xff] %v2667_v48  ;;  %v2705_v11 = vadd.f32 1.0, %v2237_v8  ;;  %v2239_v12 = vpop.eup %2238  ;;  %v2708_v15 = vpop.f32.mrf.mxu0  ;;  %v2001_v35 = vmul.f32 -1.442695, %v2667_v48  ;;  %v850_v62 = vand.u32 2147483647, %v2701_v9 }
  0xe6   : > { %v2241_v13 = vpop.eup %2240  ;;  %2248 = vpow2.f32 %v2000_v10  ;;  %v1986_v54 = vmul.f32 -1.442695, %v2708_v15  ;;  %v2776_v1 = vor.u32 1.1754944e-38, %v852_v38 }
  0xe7   : > { %2250 = vrcp.f32 %v2705_v11  ;;  %v2715_v18 = vadd.f32 1.0, %v2241_v13  ;;  %v2717_v19 = vpop.f32.mrf.mxu1  ;;  %v1077_v41 = vand.u32 2147483648, %v2705_v11  ;;  %v1075_v4 = vand.u32 2147483647, %v2705_v11 }
  0xe8   : > { %633 = vmatmul.bf16.gmra.mxu2 %v2090_v16  ;;  %v2243_v14 = vpop.eup %2242  ;;  %v1987_v3 = vmul.f32 -1.442695, %v2717_v19  ;;  %vm1071_vm4 = vweird.f32 %v2705_v11  ;;  %vm2806_vm7 = vcmp.eq.f32.partialorder %v850_v62, 8.507059e+37 }
  0xe9   : > { %682 = vmatmul.bf16.gmra.mxu3 %v2090_v16  ;;  %v2711_v16 = vadd.f32 1.0, %v2239_v12  ;;  %v2713_v17 = vpop.eup %2244  ;;  %v2719_v20 = vadd.f32 1.0, %v2243_v14  ;;  %v2782_v8 = vor.u32 1.1754944e-38, %v1077_v41  ;;  %vm861_vm8 = vweird.f32 %v2715_v18 }
  0xea   : > { %v2727_v25 = vpop.eup %2246  ;;  %v827_v26 = vmul.f32 %v2713_v17, %v2695_v5  ;;  %vm832_vm3 = vweird.f32 %v2713_v17  ;;  %v865_v41 = vand.u32 2147483647, %v2715_v18  ;;  %vm2822_vm11 = vcmp.eq.f32.partialorder %v1075_v4, 8.507059e+37 }
  0xeb   : > { %v2669_v49 = vpop.f32.mrf.mxu2  ;;  %2252 = vrcp.f32 %v2711_v16  ;;  %v842_v31 = vmul.f32 %v2727_v25, %v2701_v9  ;;  %v1092_v23 = vand.u32 2147483648, %v2711_v16  ;;  %vm2797_vm5 = vmor %vm831_vm0, %vm832_vm3  ;;  %vm847_vm6 = vweird.f32 %v2727_v25 }
  0xec   : > { %3921 = vst [vmem:[#allocation9_spill] sm:$0xff] %v2669_v49  ;;  %v2671_v50 = vpop.f32.mrf.mxu3  ;;  %v2249_v27 = vpop.eup %2248  ;;  %2254 = vrcp.f32 %v2715_v18  ;;  %v828_v30 = vsub.f32 1.0, %v827_v26  ;;  %v2135_v26 = vld [vmem:[%s2568_s22 + $0x50] sm:$0xff]  ;;  %vm876_vm9 = vweird.f32 %v2719_v20  ;;  %vm1086_vm12 = vweird.f32 %v2711_v16  ;;  %vm2832_vm13 = vmor %vm846_vm1, %vm847_vm6 }
  0xed   : > { %3922 = vst [vmem:[#allocation10_spill] sm:$0xff] %v2671_v50  ;;  %v2733_v28 = vpop.eup %2250  ;;  %2256 = vrcp.f32 %v2719_v20  ;;  %v2739_v32 = vadd.f32 1.0, %v2249_v27  ;;  %v2745_v36 = vpop.f32.mrf.mxu0  ;;  %v843_v53 = vsub.f32 1.0, %v842_v31  ;;  %1584 = vmatpush.bf16.msrb.mxu1 %v2135_v26  ;;  %v2003_v4 = vmul.f32 -1.442695, %v2671_v50 }
  0xee   : > { %v1067_v34 = vmul.f32 %v2733_v28, %v2705_v11  ;;  %v829_v46 = vmul.f32 %v2713_v17, %v828_v30  ;;  %v1988_v31 = vmul.f32 -1.442695, %v2745_v36  ;;  %vm1072_vm10 = vweird.f32 %v2733_v28 }
  0xef   : > { %v2757_v42 = vpop.f32.mrf.mxu1  ;;  %2258 = vrcp.f32 %v2739_v32  ;;  %v844_v14 = vmul.f32 %v2727_v25, %v843_v53  ;;  %vm2865_vm0 = vmor %vm1071_vm4, %vm1072_vm10  ;;  %vm2896_vm4 = vcmp.eq.f32.partialorder %v865_v41, 8.507059e+37 }
  0xf0   : > { %v1068_v63 = vsub.f32 1.0, %v1067_v34  ;;  %2260 = vpow2.f32 %v2001_v35  ;;  %v830_v13 = vadd.f32 %v2713_v17, %v829_v46  ;;  %v1989_v5 = vmul.f32 -1.442695, %v2757_v42 }
  0xf1   : > { %2262 = vpow2.f32 %v1986_v54  ;;  %v867_v46 = vand.u32 2147483648, %v2715_v18 }
  0xf2   : > { %v1069_v29 = vmul.f32 %v2733_v28, %v1068_v63  ;;  %2264 = vpow2.f32 %v1987_v3  ;;  %v834_v62 = vsel %vm2797_vm5, %v2713_v17, %v830_v13  ;;  %v845_v63 = vadd.f32 %v2727_v25, %v844_v14 }
  0xf3   : > { %v2681_v57 = vpop.f32.mrf.mxu2  ;;  %2266 = vpow2.f32 %v1988_v31  ;;  %v882_v31 = vand.u32 2147483648, %v2719_v20  ;;  %v1093_v3 = vor.u32 1.1754944e-38, %v1092_v23 }
  0xf4   : > { %3923 = vst [vmem:[#allocation11_spill] sm:$0xff] %v2681_v57  ;;  %v2683_v58 = vpop.f32.mrf.mxu3  ;;  %v1070_v17 = vadd.f32 %v2733_v28, %v1069_v29  ;;  %2268 = vpow2.f32 %v1989_v5  ;;  %v849_v5 = vsel %vm2832_vm13, %v2727_v25, %v845_v63  ;;  %v3943_v63 = vand.u32 2147483647, %v2711_v16 }
  0xf5   : > { %3924 = vst [vmem:[#allocation12_spill] sm:$0xff] %v2683_v58  ;;  %v2815_v54 = vpop.f32.mrf.mxu0  ;;  %v883_v41 = vor.u32 1.1754944e-38, %v882_v31  ;;  %v1105_v31 = vand.u32 2147483647, %v2739_v32 }
  0xf6   : > { %3933 = vst [vmem:[#allocation15_spill] sm:$0xff] %v2815_v54  ;;  %v1074_v25 = vsel %vm2865_vm0, %v2733_v28, %v1070_v17 }
  0xf7   : > { %v2839_v13 = vpop.f32.mrf.mxu1  ;;  %v1079_v23 = vsel %vm2822_vm11, %v2782_v8, %v1074_v25  ;;  %vm2976_vm10 = vcmp.eq.f32.partialorder %v1105_v31, 8.507059e+37 }
  0xf8   : > { %638 = vmatmul.bf16.gmra.mxu2 %v2091_v37  ;;  %3938 = vst [vmem:[#allocation16_spill] sm:$0xff] %v2839_v13 }
  0xf9   : > { %687 = vmatmul.bf16.gmra.mxu3 %v2091_v37  ;;  %v2747_v37 = vpop.eup %2252 }
  0xfa   : > { %v1082_v0 = vmul.f32 %v2747_v37, %v2711_v16  ;;  %vm1087_vm14 = vweird.f32 %v2747_v37 }
  0xfb   : > { %v2697_v6 = vpop.f32.mrf.mxu2 }
  0xfc   : > { %3925 = vst [vmem:[#allocation13_spill] sm:$0xff] %v2697_v6  ;;  %v2699_v7 = vpop.f32.mrf.mxu3  ;;  %v1083_v30 = vsub.f32 1.0, %v1082_v0 }
 0x103   : > { %v2721_v21 = vpop.f32.mrf.mxu2 }
 0x104   : > { %v2723_v22 = vpop.f32.mrf.mxu3 }
 0x108   : > { %643 = vmatmul.bf16.gmra.mxu2 %v2092_v39 }
 0x109   : > { %692 = vmatmul.bf16.gmra.mxu3 %v2092_v39  ;;  %v2750_v39 = vpop.eup %2254 }
 0x10a   : > { %v2759_v45 = vpop.eup %2256  ;;  %v857_v2 = vmul.f32 %v2750_v39, %v2715_v18  ;;  %vm862_vm15 = vweird.f32 %v2750_v39 }
 0x10b   : > { %v2764_v55 = vpop.f32.mrf.mxu2  ;;  %v872_v12 = vmul.f32 %v2759_v45, %v2719_v20  ;;  %v2804_v33 = vpop.eup %2258  ;;  %vm877_vm1 = vweird.f32 %v2759_v45  ;;  %vm2886_vm3 = vmor %vm861_vm8, %vm862_vm15 }
 0x10c   : > { %v2766_v56 = vpop.f32.mrf.mxu3  ;;  %v858_v35 = vsub.f32 1.0, %v857_v2  ;;  %v2261_v38 = vpop.eup %2260  ;;  %v2002_v2 = vmul.f32 -1.442695, %v2669_v49  ;;  %v1097_v26 = vmul.f32 %v2804_v33, %v2739_v32  ;;  %vm2904_vm5 = vmor %vm876_vm9, %vm877_vm1  ;;  %vm1102_vm9 = vweird.f32 %v2804_v33 }
 0x10d   : > { %3926 = vst [vmem:[#allocation14_spill] sm:$0xff] %v2766_v56  ;;  %v873_v53 = vsub.f32 1.0, %v872_v12  ;;  %v1084_v12 = vmul.f32 %v2747_v37, %v1083_v30  ;;  %v2263_v14 = vpop.eup %2262  ;;  %v2844_v9 = vadd.f32 1.0, %v2261_v38  ;;  %v880_v30 = vand.u32 2147483647, %v2719_v20  ;;  %vm2922_vm8 = vmor %vm1086_vm12, %vm1087_vm14 }
 0x10e   : > { %v859_v24 = vmul.f32 %v2750_v39, %v858_v35  ;;  %v2265_v50 = vpop.eup %2264  ;;  %v839_v35 = vsel %vm2768_vm2, %v2753_v40, %v834_v62  ;;  %2270 = vpow2.f32 %v2002_v2  ;;  %v2871_v40 = vadd.f32 1.0, %v2263_v14 }
 0x10f   : > { %v874_v29 = vmul.f32 %v2759_v45, %v873_v53  ;;  %v1085_v53 = vadd.f32 %v2747_v37, %v1084_v12  ;;  %2272 = vpow2.f32 %v2003_v4  ;;  %v1098_v62 = vsub.f32 1.0, %v1097_v26  ;;  %v2267_v11 = vpop.eup %2266 }
 0x110   : > { %v860_v59 = vadd.f32 %v2750_v39, %v859_v24  ;;  %2274 = vrcp.f32 %v2844_v9  ;;  %vm2880_vm2 = vcmp.eq.f32.partialorder %v3943_v63, 8.507059e+37  ;;  %v2891_v17 = vadd.f32 1.0, %v2265_v50  ;;  %v2269_v4 = vpop.eup %2268  ;;  %v2126_v50 = vld [vmem:[%s2568_s22 + $0x8] sm:$0xff] }
 0x111   : > { %v875_v28 = vadd.f32 %v2759_v45, %v874_v29  ;;  %v2894_v14 = vmul.f32 %v839_v35, %v2673_v51  ;;  %v868_v26 = vor.u32 1.1754944e-38, %v867_v46  ;;  %vm2908_vm6 = vcmp.eq.f32.partialorder %v880_v30, 8.507059e+37  ;;  %v2927_v46 = vpop.f32.mrf.mxu0  ;;  %1536 = vmatpush.bf16.msrb.mxu0 %v2126_v50 }
 0x112   : > { %v854_v51 = vsel %vm2806_vm7, %v2776_v1, %v849_v5  ;;  %2276 = vrcp.f32 %v2871_v40  ;;  %3956 = vst [vmem:[#allocation19_spill] sm:$0xff] %v2927_v46  ;;  %v1089_v1 = vsel %vm2922_vm8, %v2747_v37, %v1085_v53  ;;  %v864_v8 = vsel %vm2886_vm3, %v2750_v39, %v860_v59  ;;  %v2945_v37 = vpop.f32.mrf.mxu1 }
 0x113   : > { %v2846_v27 = vpop.f32.mrf.mxu2  ;;  %v1099_v16 = vmul.f32 %v2804_v33, %v1098_v62  ;;  %v2936_v34 = vadd.f32 1.0, %v2267_v11  ;;  %v879_v30 = vsel %vm2904_vm5, %v2759_v45, %v875_v28  ;;  %2278 = vrcp.f32 %v2891_v17  ;;  %3957 = vst [vmem:[#allocation20_spill] sm:$0xff] %v2945_v37 }
 0x114   : > { %3939 = vst [vmem:[#allocation17_spill] sm:$0xff] %v2846_v27  ;;  %v2848_v10 = vpop.f32.mrf.mxu3  ;;  %v2271_v29 = vpop.eup %2270  ;;  %v2943_v35 = vadd.f32 1.0, %v2269_v4  ;;  %v2950_v39 = vmul.f32 %v854_v51, %v2675_v52  ;;  %v2953_v38 = vmul.f32 %v1079_v23, %v2659_v43  ;;  %vm1101_vm7 = vweird.f32 %v2739_v32  ;;  %v2134_v51 = vld [vmem:[%s2568_s22 + $0x48] sm:$0xff] }
 0x115   : > { %3940 = vst [vmem:[#allocation18_spill] sm:$0xff] %v2848_v10  ;;  %v2273_v0 = vpop.eup %2272  ;;  %v1107_v45 = vand.u32 2147483648, %v2739_v32  ;;  %v1094_v59 = vsel %vm2880_vm2, %v1093_v3, %v1089_v1  ;;  %v869_v62 = vsel %vm2896_vm4, %v868_v26, %v864_v8  ;;  %v2966_v43 = vadd.f32 1.0, %v2271_v29  ;;  %vm3002_vm11 = vmor %vm1101_vm7, %vm1102_vm9  ;;  %1585 = vmatpush.bf16.msrb.mxu1 %v2134_v51 }
 0x116   : > { %v2947_v5 = vpop.eup %2274  ;;  %3958 = vst [vmem:[#allocation21_spill] sm:$0xff] %v2953_v38  ;;  %v884_v52 = vsel %vm2908_vm6, %v883_v41, %v879_v30  ;;  %v1100_v11 = vadd.f32 %v2804_v33, %v1099_v16  ;;  %v2971_v63 = vadd.f32 1.0, %v2273_v0  ;;  %2280 = vrcp.f32 %v2936_v34 }
 0x117   : > { %3959 = vst [vmem:[#allocation22_spill] sm:$0xff] %v2966_v43  ;;  %v1112_v12 = vmul.f32 %v2947_v5, %v2844_v9  ;;  %2282 = vrcp.f32 %v2943_v35  ;;  %v1990_v28 = vmul.f32 -1.442695, %v2815_v54  ;;  %v2985_v4 = vmul.f32 %v1094_v59, %v2661_v44  ;;  %v2125_v59 = vld [vmem:[%s2568_s22] sm:$0xff] }
 0x118   : > { %v2974_v2 = vpop.eup %2276  ;;  %v2988_v24 = vmul.f32 %v869_v62, %v2686_v60  ;;  %v1108_v26 = vor.u32 1.1754944e-38, %v1107_v45  ;;  %v1992_v18 = vmul.f32 -1.442695, %v2927_v46  ;;  %v2996_v20 = vmul.f32 %v884_v52, %v2688_v61  ;;  %v2133_v62 = vld [vmem:[%s2568_s22 + $0x40] sm:$0xff]  ;;  %1537 = vmatpush.bf16.msrb.mxu0 %v2125_v59 }
 0x119   : > { %3962 = vst [vmem:[#allocation23_spill] sm:$0xff] %v2985_v4  ;;  %v2993_v23 = vpop.eup %2278  ;;  %2284 = vrcp.f32 %v2966_v43  ;;  %v3008_v60 = vmul.f32 -1.442695, %v2681_v57  ;;  %v1991_v41 = vmul.f32 -1.442695, %v2839_v13  ;;  %v1104_v61 = vsel %vm3002_vm11, %v2804_v33, %v1100_v11  ;;  %v3022_v0 = vpop.f32.mrf.mxu0  ;;  %1586 = vmatpush.bf16.msrb.mxu1 %v2133_v62 }
 0x11a   : > { %v887_v29 = vmul.f32 %v2974_v2, %v2871_v40  ;;  %2286 = vrcp.f32 %v2971_v63  ;;  %v1993_v32 = vmul.f32 -1.442695, %v2945_v37  ;;  %v1113_v1 = vsub.f32 1.0, %v1112_v12  ;;  %3965 = vst [vmem:[#allocation24_spill] sm:$0xff] %v3022_v0  ;;  %v3044_v51 = vpop.f32.mrf.mxu1 }
 0x11b   : > { %v2957_v53 = vpop.f32.mrf.mxu2  ;;  %v1122_v8 = vand.u32 2147483648, %v2844_v9  ;;  %v3020_v16 = vmul.f32 -1.442695, %v2683_v58  ;;  %2288 = vpow2.f32 %v1990_v28  ;;  %v897_v30 = vand.u32 2147483648, %v2871_v40  ;;  %3966 = vst [vmem:[#allocation25_spill] sm:$0xff] %v3044_v51 }
 0x11c   : > { %v2959_v25 = vpop.f32.mrf.mxu3  ;;  %v3024_v33 = vpop.eup %2280  ;;  %v902_v31 = vmul.f32 %v2993_v23, %v2891_v17  ;;  %v3030_v45 = vmul.f32 -1.442695, %v2697_v6  ;;  %2290 = vpow2.f32 %v1992_v18  ;;  %v1109_v28 = vsel %vm2976_vm10, %v1108_v26, %v1104_v61 }
 0x11d   : > { %v3038_v12 = vpop.eup %2282  ;;  %vm1116_vm12 = vweird.f32 %v2844_v9  ;;  %v1120_v50 = vand.u32 2147483647, %v2844_v9  ;;  %2292 = vpow2.f32 %v1991_v41  ;;  %v888_v44 = vsub.f32 1.0, %v887_v29 }
 0x11e   : > { %v895_v18 = vand.u32 2147483647, %v2871_v40  ;;  %v912_v6 = vand.u32 2147483648, %v2891_v17  ;;  %2294 = vpow2.f32 %v1993_v32  ;;  %v1114_v3 = vmul.f32 %v2947_v5, %v1113_v1 }
 0x11f   : > { %v3048_v58 = vpop.eup %2284  ;;  %v3051_v26 = vor.u32 1.1754944e-38, %v1122_v8  ;;  %vm891_vm13 = vweird.f32 %v2871_v40  ;;  %v1137_v41 = vand.u32 2147483648, %v2966_v43  ;;  %v917_v61 = vmul.f32 %v3024_v33, %v2936_v34 }
 0x120   : > { %v3057_v29 = vpop.eup %2286  ;;  %v3060_v57 = vmul.f32 %v1109_v28, %v2665_v47  ;;  %v3062_v32 = vor.u32 1.1754944e-38, %v897_v30  ;;  %v903_v59 = vsub.f32 1.0, %v902_v31  ;;  %v932_v1 = vmul.f32 %v3038_v12, %v2943_v35 }
 0x121   : > { %v2289_v8 = vpop.eup %2288  ;;  %vm1117_vm14 = vweird.f32 %v2947_v5  ;;  %vm906_vm15 = vweird.f32 %v2891_v17  ;;  %v910_v62 = vand.u32 2147483647, %v2891_v17  ;;  %v889_v38 = vmul.f32 %v2974_v2, %v888_v44 }
 0x122   : > { %3967 = vst [vmem:[#allocation26_spill] sm:$0xff] %v3060_v57  ;;  %v2291_v4 = vpop.eup %2290  ;;  %vm892_vm0 = vweird.f32 %v2974_v2  ;;  %v3072_v47 = vor.u32 1.1754944e-38, %v912_v6  ;;  %v3076_v30 = vmul.f32 %v3048_v58, %v2966_v43  ;;  %v3079_v28 = vadd.f32 %v2947_v5, %v1114_v3  ;;  %vm3103_vm3 = vmor %vm1116_vm12, %vm1117_vm14  ;;  %v3131_v37 = vpop.f32.mrf.mxu1 }
 0x123   : > { %v3034_v52 = vpop.f32.mrf.mxu2  ;;  %v2293_v31 = vpop.eup %2292  ;;  %v3081_v57 = vor.u32 1.1754944e-38, %v1137_v41  ;;  %v918_v49 = vsub.f32 1.0, %v917_v61  ;;  %v904_v44 = vmul.f32 %v2993_v23, %v903_v59  ;;  %vm921_vm1 = vweird.f32 %v2936_v34  ;;  %3976 = vst [vmem:[#allocation29_spill] sm:$0xff] %v3131_v37  ;;  %vm3149_vm9 = vmor %vm891_vm13, %vm892_vm0 }
 0x124   : > { %v3036_v11 = vpop.f32.mrf.mxu3  ;;  %v2295_v27 = vpop.eup %2294  ;;  %v933_v6 = vsub.f32 1.0, %v932_v1  ;;  %v3086_v48 = vadd.f32 1.0, %v2289_v8  ;;  %vm907_vm2 = vweird.f32 %v2993_v23  ;;  %v925_v3 = vand.u32 2147483647, %v2936_v34 }
 0x125   : > { %3968 = vst [vmem:[#allocation27_spill] sm:$0xff] %v3081_v57  ;;  %2296 = vpow2.f32 %v3008_v60  ;;  %v3095_v41 = vadd.f32 1.0, %v2291_v4  ;;  %v3097_v61 = vpop.f32.mrf.mxu0  ;;  %v890_v1 = vadd.f32 %v2974_v2, %v889_v38  ;;  %vm3108_vm4 = vcmp.eq.f32.partialorder %v895_v18, 8.507059e+37  ;;  %vm3161_vm11 = vmor %vm906_vm15, %vm907_vm2 }
 0x126   : > { %3969 = vst [vmem:[#allocation28_spill] sm:$0xff] %v3097_v61  ;;  %vm3112_vm5 = vcmp.eq.f32.partialorder %v910_v62, 8.507059e+37  ;;  %v927_v10 = vand.u32 2147483648, %v2936_v34  ;;  %v3118_v57 = vadd.f32 1.0, %v2293_v31  ;;  %v1119_v9 = vsel %vm3103_vm3, %v2947_v5, %v3079_v28 }
 0x127   : > { %v3126_v38 = vmul.f32 %v3057_v29, %v2971_v63  ;;  %v919_v18 = vmul.f32 %v3024_v33, %v918_v49  ;;  %v3129_v62 = vadd.f32 1.0, %v2295_v27  ;;  %vm3133_vm6 = vcmp.eq.f32.partialorder %v1120_v50, 8.507059e+37 }
 0x128   : > { %v905_v31 = vadd.f32 %v2993_v23, %v904_v44  ;;  %v934_v13 = vmul.f32 %v3038_v12, %v933_v6  ;;  %2298 = vrcp.f32 %v3086_v48  ;;  %v1996_v5 = vmul.f32 -1.442695, %v3097_v61 }
 0x129   : > { %vm922_vm8 = vweird.f32 %v3024_v33  ;;  %vm936_vm7 = vweird.f32 %v2943_v35  ;;  %2300 = vrcp.f32 %v3095_v41  ;;  %v1994_v49 = vmul.f32 -1.442695, %v3022_v0 }
 0x12a   : > { %vm937_vm10 = vweird.f32 %v3038_v12  ;;  %v940_v50 = vand.u32 2147483647, %v2943_v35  ;;  %2302 = vrcp.f32 %v3118_v57  ;;  %v1997_v28 = vmul.f32 -1.442695, %v3131_v37  ;;  %vm3173_vm12 = vmor %vm921_vm1, %vm922_vm8 }
 0x12b   : > { %v3088_v56 = vpop.f32.mrf.mxu2  ;;  %v2297_v44 = vpop.eup %2296  ;;  %v920_v40 = vadd.f32 %v3024_v33, %v919_v18  ;;  %v942_v59 = vand.u32 2147483648, %v2943_v35  ;;  %2304 = vrcp.f32 %v3129_v62  ;;  %v1995_v0 = vmul.f32 -1.442695, %v3044_v51  ;;  %vm3196_vm14 = vmor %vm936_vm7, %vm937_vm10 }
 0x12c   : > { %v3090_v43 = vpop.f32.mrf.mxu3  ;;  %vm3177_vm13 = vcmp.eq.f32.partialorder %v925_v3, 8.507059e+37  ;;  %v935_v18 = vadd.f32 %v3038_v12, %v934_v13  ;;  %2306 = vpow2.f32 %v1996_v5  ;;  %v1340_v61 = vmul.f32 %v2988_v24, %v3034_v52 }
 0x12d   : > { %v894_v34 = vsel %vm3149_vm9, %v2974_v2, %v890_v1  ;;  %v1143_v46 = vsub.f32 1.0, %v3126_v38  ;;  %v928_v3 = vor.u32 1.1754944e-38, %v927_v10  ;;  %2308 = vpow2.f32 %v1994_v49 }
 0x12e   : > { %v3200_v24 = vpop.eup %2298  ;;  %v909_v52 = vsel %vm3161_vm11, %v2993_v23, %v905_v31  ;;  %v3205_v5 = vadd.f32 1.0, %v2297_v44  ;;  %2310 = vpow2.f32 %v1997_v28  ;;  %v1338_v10 = vmul.f32 %v2894_v14, %v2957_v53 }
 0x12f   : > { %v3209_v2 = vpop.eup %2300  ;;  %v924_v35 = vsel %vm3173_vm12, %v3024_v33, %v920_v40  ;;  %vm3214_vm15 = vcmp.eq.f32.partialorder %v940_v50, 8.507059e+37  ;;  %v943_v38 = vor.u32 1.1754944e-38, %v942_v59  ;;  %2312 = vpow2.f32 %v1995_v0 }
 0x130   : > { %v3218_v49 = vpop.eup %2302  ;;  %v939_v23 = vsel %vm3196_vm14, %v3038_v12, %v935_v18  ;;  %v1339_v14 = vmul.f32 %v2950_v39, %v2959_v25  ;;  %v1386_v53 = vpack.c.bf16 %v1340_v61, %v1338_v10  ;;  %v1341_v37 = vmul.f32 %v2996_v20, %v3036_v11 }
 0x131   : > { %v3227_v33 = vpop.eup %2304  ;;  %v3232_v31 = vsel %vm3133_vm6, %v3051_v26, %v1119_v9  ;;  %v899_v0 = vsel %vm3108_vm4, %v3062_v32, %v894_v34  ;;  %v914_v12 = vsel %vm3112_vm5, %v3072_v47, %v909_v52  ;;  %v1152_v39 = vand.u32 2147483648, %v2971_v63 }
 0x132   : > { %v2307_v25 = vpop.eup %2306  ;;  %v929_v20 = vsel %vm3177_vm13, %v928_v3, %v924_v35  ;;  %v947_v11 = vmul.f32 %v3200_v24, %v3086_v48  ;;  %v977_v26 = vmul.f32 %v3209_v2, %v3095_v41  ;;  %v1387_v61 = vpack.c.bf16 %v1341_v37, %v1339_v14  ;;  %1538 = vmatmul.bf16.vlgmr.msrb.gmra.mxu0 %v1386_v53 }
 0x133   : > { %v3184_v54 = vpop.f32.mrf.mxu2  ;;  %v2309_v8 = vpop.eup %2308  ;;  %v3991_v32 = vsub.f32 1.0, %v3076_v30  ;;  %v944_v47 = vsel %vm3214_vm15, %v943_v38, %v939_v23  ;;  %2314 = vpow2.f32 %v3020_v16  ;;  %v962_v4 = vmul.f32 %v3218_v49, %v3118_v57 }
 0x134   : > { %v3186_v51 = vpop.f32.mrf.mxu3  ;;  %v2311_v9 = vpop.eup %2310  ;;  %v1310_v27 = vmul.f32 %v899_v0, %v2708_v15  ;;  %v3259_v50 = vmul.f32 %v3057_v29, %v1143_v46  ;;  %2316 = vrcp.f32 %v3205_v5  ;;  %v992_v30 = vmul.f32 %v3227_v33, %v3129_v62  ;;  %1587 = vmatmul.bf16.vlgmr.msrb.gmra.mxu1 %v1387_v61 }
 0x135   : > { %v3250_v60 = vmul.f32 %v3048_v58, %v3991_v32  ;;  %v2313_v16 = vpop.eup %2312  ;;  %v1311_v6 = vmul.f32 %v914_v12, %v2717_v19  ;;  %v1312_v40 = vmul.f32 %v929_v20, %v2745_v36  ;;  %2318 = vpow2.f32 %v3030_v45 }
 0x136   : > { %v3271_v15 = vadd.f32 1.0, %v2307_v25  ;;  %v1313_v46 = vmul.f32 %v944_v47, %v2757_v42  ;;  %v948_v59 = vsub.f32 1.0, %v947_v11  ;;  %v978_v17 = vsub.f32 1.0, %v977_v26 }
 0x137   : > { %v3274_v18 = vadd.f32 1.0, %v2309_v8  ;;  %vm951_vm0 = vweird.f32 %v3086_v48  ;;  %v955_v34 = vand.u32 2147483647, %v3086_v48  ;;  %v963_v3 = vsub.f32 1.0, %v962_v4 }
 0x138   : > { %v3278_v13 = vadd.f32 1.0, %v2311_v9  ;;  %v957_v19 = vand.u32 2147483648, %v3086_v48  ;;  %vm966_vm1 = vweird.f32 %v3118_v57  ;;  %v993_v36 = vsub.f32 1.0, %v992_v30  ;;  %v4005_v48 = vld [vmem:[#allocation15_spill] sm:$0xff]  ;;  %v4006_v30 = vld [vmem:[#allocation16_spill] sm:$0xff] }
 0x139   : > { %v3282_v45 = vadd.f32 1.0, %v2313_v16  ;;  %v2315_v52 = vpop.eup %2314  ;;  %vm952_vm2 = vweird.f32 %v3200_v24  ;;  %v970_v42 = vand.u32 2147483647, %v3118_v57  ;;  %v972_v10 = vand.u32 2147483648, %v3118_v57 }
 0x13a   : > { %2320 = vrcp.f32 %v3271_v15  ;;  %v3288_v35 = vpop.eup %2316  ;;  %v949_v1 = vmul.f32 %v3200_v24, %v948_v59  ;;  %v979_v38 = vmul.f32 %v3209_v2, %v978_v17  ;;  %v1344_v23 = vmul.f32 %v1312_v40, %v3184_v54  ;;  %vm3316_vm8 = vmor %vm951_vm0, %vm952_vm2 }
 0x13b   : > { %v3264_v28 = vpop.f32.mrf.mxu2  ;;  %2322 = vrcp.f32 %v3274_v18  ;;  %v3294_v14 = vpop.eup %2318  ;;  %v964_v53 = vmul.f32 %v3218_v49, %v963_v3  ;;  %vm981_vm3 = vweird.f32 %v3095_v41  ;;  %vm982_vm4 = vweird.f32 %v3209_v2 }
 0x13c   : > { %v3266_v44 = vpop.f32.mrf.mxu3  ;;  %2324 = vrcp.f32 %v3278_v13  ;;  %v994_v37 = vmul.f32 %v3227_v33, %v993_v36  ;;  %v1342_v0 = vmul.f32 %v1310_v27, %v3088_v56  ;;  %v1345_v12 = vmul.f32 %v1313_v46, %v3186_v51  ;;  %vm3332_vm9 = vmor %vm981_vm3, %vm982_vm4 }
 0x13d   : > { %2326 = vrcp.f32 %v3282_v45  ;;  %vm967_vm5 = vweird.f32 %v3218_v49  ;;  %v985_v20 = vand.u32 2147483647, %v3095_v41  ;;  %v987_v11 = vand.u32 2147483648, %v3095_v41 }
 0x13e   : > { %vm996_vm6 = vweird.f32 %v3129_v62  ;;  %v980_v51 = vadd.f32 %v3209_v2, %v979_v38  ;;  %vm997_vm7 = vweird.f32 %v3227_v33  ;;  %v1343_v26 = vmul.f32 %v1311_v6, %v3090_v43  ;;  %vm3345_vm10 = vmor %vm966_vm1, %vm967_vm5 }
 0x13f   : > { %v1388_v61 = vpack.c.bf16 %v1344_v23, %v1342_v0  ;;  %v950_v32 = vadd.f32 %v3200_v24, %v949_v1  ;;  %v965_v47 = vadd.f32 %v3218_v49, %v964_v53  ;;  %v2007_v4 = vmul.f32 -1.442695, %v2699_v7  ;;  %vm3365_vm13 = vmor %vm996_vm6, %vm997_vm7 }
 0x140   : > { %v3323_v8 = vpop.eup %2320  ;;  %v1002_v9 = vand.u32 2147483648, %v3129_v62  ;;  %v3339_v27 = vadd.f32 1.0, %v2315_v52  ;;  %v995_v41 = vadd.f32 %v3227_v33, %v994_v37  ;;  %v1000_v16 = vand.u32 2147483647, %v3129_v62 }
 0x141   : > { %v3337_v43 = vpop.eup %2322  ;;  %v1389_v6 = vpack.c.bf16 %v1345_v12, %v1343_v26  ;;  %vm3353_vm11 = vcmp.eq.f32.partialorder %v955_v34, 8.507059e+37  ;;  %v958_v59 = vor.u32 1.1754944e-38, %v957_v19  ;;  %vm3357_vm12 = vcmp.eq.f32.partialorder %v970_v42, 8.507059e+37 }
 0x142   : > { %v3351_v40 = vpop.eup %2324  ;;  %v988_v57 = vor.u32 1.1754944e-38, %v987_v11  ;;  %v973_v34 = vor.u32 1.1754944e-38, %v972_v10  ;;  %v984_v19 = vsel %vm3332_vm9, %v3209_v2, %v980_v51  ;;  %vm986_vm14 = vcmp.eq.f32.partialorder %v985_v20, 8.507059e+37  ;;  %1543 = vmatmul.bf16.gmra.mxu0 %v1388_v61 }
 0x143   : > { %v3304_v25 = vpop.f32.mrf.mxu2  ;;  %v3369_v36 = vpop.eup %2326  ;;  %v1037_v52 = vmul.f32 %v3323_v8, %v3271_v15  ;;  %v954_v62 = vsel %vm3316_vm8, %v3200_v24, %v950_v32  ;;  %v969_v42 = vsel %vm3345_vm10, %v3218_v49, %v965_v47  ;;  %v1003_v1 = vor.u32 1.1754944e-38, %v1002_v9  ;;  %v4004_v32 = vld [vmem:[#allocation19_spill] sm:$0xff] }
 0x144   : > { %v3306_v54 = vpop.f32.mrf.mxu3  ;;  %v1007_v10 = vmul.f32 %v3337_v43, %v3274_v18  ;;  %v999_v2 = vsel %vm3365_vm13, %v3227_v33, %v995_v41  ;;  %vm1001_vm15 = vcmp.eq.f32.partialorder %v1000_v16, 8.507059e+37  ;;  %v2008_v38 = vmul.f32 -1.442695, %v2721_v21  ;;  %1592 = vmatmul.bf16.gmra.mxu1 %v1389_v6  ;;  %v4007_v6 = vld [vmem:[#allocation20_spill] sm:$0xff] }
 0x145   : > { %v1052_v23 = vmul.f32 %v3351_v40, %v3278_v13  ;;  %2328 = vpow2.f32 %v2007_v4  ;;  %v989_v49 = vsel %vm986_vm14, %v988_v57, %v984_v19  ;;  %v2009_v37 = vmul.f32 -1.442695, %v2723_v22 }
 0x146   : > { %v1022_v0 = vmul.f32 %v3369_v36, %v3282_v45  ;;  %v3399_v33 = vmul.f32 %v3288_v35, %v3205_v5  ;;  %v959_v12 = vsel %vm3353_vm11, %v958_v59, %v954_v62  ;;  %v974_v20 = vsel %vm3357_vm12, %v973_v34, %v969_v42 }
 0x147   : > { %v1038_v11 = vsub.f32 1.0, %v1037_v52  ;;  %2330 = vrcp.f32 %v3339_v27  ;;  %v1004_v56 = vsel %vm1001_vm15, %v1003_v1, %v999_v2  ;;  %v1008_v51 = vsub.f32 1.0, %v1007_v10 }
 0x148   : > { %v3407_v26 = vmul.f32 -1.442695, %v2764_v55  ;;  %v3410_v61 = vadd.f32 1.0, %v3294_v14  ;;  %v1316_v47 = vmul.f32 %v989_v49, %v4004_v32  ;;  %2332 = vpow2.f32 %v2008_v38 }
 0x149   : > { %v1053_v4 = vsub.f32 1.0, %v1052_v23  ;;  %v1314_v9 = vmul.f32 %v959_v12, %v4005_v48  ;;  %v1315_v41 = vmul.f32 %v974_v20, %v4006_v30  ;;  %2334 = vpow2.f32 %v2009_v37 }
 0x14a   : > { %v1023_v16 = vsub.f32 1.0, %v1022_v0  ;;  %v1317_v46 = vmul.f32 %v1004_v56, %v4007_v6  ;;  %vm1011_vm0 = vweird.f32 %v3274_v18  ;;  %v1039_v59 = vmul.f32 %v3323_v8, %v1038_v11 }
 0x14b   : > { %v3390_v24 = vpop.f32.mrf.mxu2  ;;  %v1348_v17 = vmul.f32 %v1316_v47, %v3304_v25  ;;  %v2329_v14 = vpop.eup %2328  ;;  %v1009_v57 = vmul.f32 %v3337_v43, %v1008_v51  ;;  %vm1012_vm1 = vweird.f32 %v3337_v43  ;;  %v1015_v3 = vand.u32 2147483647, %v3274_v18 }
 0x14c   : > { %v3392_v53 = vpop.f32.mrf.mxu3  ;;  %vm1041_vm2 = vweird.f32 %v3271_v15  ;;  %vm1042_vm3 = vweird.f32 %v3323_v8  ;;  %v1054_v34 = vmul.f32 %v3351_v40, %v1053_v4  ;;  %v1346_v19 = vmul.f32 %v1314_v9, %v3264_v28  ;;  %vm3457_vm9 = vmor %vm1011_vm0, %vm1012_vm1 }
 0x14d   : > { %v1349_v52 = vmul.f32 %v1317_v46, %v3306_v54  ;;  %v3431_v42 = vpop.eup %2330  ;;  %v1024_v1 = vmul.f32 %v3369_v36, %v1023_v16  ;;  %v1045_v10 = vand.u32 2147483647, %v3271_v15  ;;  %v1047_v2 = vand.u32 2147483648, %v3271_v15  ;;  %vm3447_vm7 = vmor %vm1041_vm2, %vm1042_vm3 }
 0x14e   : > { %vm1056_vm4 = vweird.f32 %v3278_v13  ;;  %v2333_v38 = vpop.eup %2332  ;;  %v1040_v23 = vadd.f32 %v3323_v8, %v1039_v59  ;;  %vm1057_vm5 = vweird.f32 %v3351_v40  ;;  %v1347_v28 = vmul.f32 %v1315_v41, %v3266_v44 }
 0x14f   : > { %v1390_v54 = vpack.c.bf16 %v1348_v17, %v1346_v19  ;;  %v2335_v49 = vpop.eup %2334  ;;  %v1017_v37 = vand.u32 2147483648, %v3274_v18  ;;  %vm1026_vm6 = vweird.f32 %v3282_v45  ;;  %vm1027_vm8 = vweird.f32 %v3369_v36  ;;  %vm3472_vm10 = vmor %vm1056_vm4, %vm1057_vm5 }
 0x150   : > { %v1062_v12 = vand.u32 2147483648, %v3278_v13  ;;  %v1010_v44 = vadd.f32 %v3337_v43, %v1009_v57  ;;  %v1055_v11 = vadd.f32 %v3351_v40, %v1054_v34  ;;  %v1060_v15 = vand.u32 2147483647, %v3278_v13  ;;  %vm3494_vm13 = vmor %vm1026_vm6, %vm1027_vm8 }
 0x151   : > { %v1391_v56 = vpack.c.bf16 %v1349_v52, %v1347_v28  ;;  %v1172_v51 = vmul.f32 %v3431_v42, %v3339_v27  ;;  %v3465_v32 = vadd.f32 1.0, %v2329_v14  ;;  %v1032_v47 = vand.u32 2147483648, %v3282_v45 }
 0x152   : > { %v1048_v4 = vor.u32 1.1754944e-38, %v1047_v2  ;;  %vm1132_vm11 = vweird.f32 %v3048_v58  ;;  %v1025_v48 = vadd.f32 %v3369_v36, %v1024_v1  ;;  %v1030_v9 = vand.u32 2147483647, %v3282_v45  ;;  %1548 = vmatmul.bf16.gmra.mxu0 %v1390_v54  ;;  %v4025_v54 = vld [vmem:[#allocation28_spill] sm:$0xff]  ;;  %v4039_v45 = vld [vmem:[#allocation21_spill] sm:$0xff] }
 0x153   : > { %v3427_v62 = vpop.f32.mrf.mxu2  ;;  %v1044_v30 = vsel %vm3447_vm7, %v3323_v8, %v1040_v23  ;;  %vm3482_vm12 = vcmp.eq.f32.partialorder %v1045_v10, 8.507059e+37  ;;  %v3486_v13 = vadd.f32 1.0, %v2333_v38  ;;  %v3488_v16 = vadd.f32 1.0, %v2335_v49  ;;  %v4018_v8 = vld [vmem:[#allocation22_spill] sm:$0xff]  ;;  %v4024_v23 = vld [vmem:[#allocation8_spill] sm:$0xff] }
 0x154   : > { %v3429_v25 = vpop.f32.mrf.mxu3  ;;  %v1018_v6 = vor.u32 1.1754944e-38, %v1017_v37  ;;  %v1063_v59 = vor.u32 1.1754944e-38, %v1062_v12  ;;  %vm1131_vm14 = vweird.f32 %v4018_v8  ;;  %v1014_v17 = vsel %vm3457_vm9, %v3337_v43, %v1010_v44  ;;  %1597 = vmatmul.bf16.gmra.mxu1 %v1391_v56  ;;  %v4026_v37 = vld [vmem:[#allocation17_spill] sm:$0xff] }
 0x155   : > { %vm3502_vm15 = vcmp.eq.f32.partialorder %v1015_v3, 8.507059e+37  ;;  %v1059_v57 = vsel %vm3472_vm10, %v3351_v40, %v1055_v11  ;;  %vm3509_vm0 = vcmp.eq.f32.partialorder %v1060_v15, 8.507059e+37  ;;  %vm1146_vm1 = vweird.f32 %v2971_v63  ;;  %v4031_v15 = vld [vmem:[#allocation29_spill] sm:$0xff]  ;;  %vm3570_vm6 = vmor %vm1131_vm14, %vm1132_vm11 }
 0x156   : > { %v1158_v52 = vsub.f32 1.0, %v3399_v33  ;;  %2336 = vrcp.f32 %v3410_v61  ;;  %v1033_v43 = vor.u32 1.1754944e-38, %v1032_v47  ;;  %v1049_v3 = vsel %vm3482_vm12, %v1048_v4, %v1044_v30  ;;  %v4023_v33 = vld [vmem:[#allocation14_spill] sm:$0xff] }
 0x157   : > { %v1173_v1 = vsub.f32 1.0, %v1172_v51  ;;  %2338 = vrcp.f32 %v3465_v32  ;;  %v1029_v40 = vsel %vm3494_vm13, %v3369_v36, %v1025_v48  ;;  %vm1031_vm2 = vcmp.eq.f32.partialorder %v1030_v9, 8.507059e+37  ;;  %v4032_v51 = vld [vmem:[#allocation18_spill] sm:$0xff] }
 0x158   : > { %2340 = vrcp.f32 %v3486_v13  ;;  %v1019_v10 = vsel %vm3502_vm15, %v1018_v6, %v1014_v17  ;;  %v2011_v2 = vmul.f32 -1.442695, %v4023_v33  ;;  %v1064_v38 = vsel %vm3509_vm0, %v1063_v59, %v1059_v57  ;;  %v4036_v6 = vld [vmem:[#allocation25_spill] sm:$0xff] }
 0x159   : > { %v1325_v28 = vmul.f32 %v3232_v31, %v4024_v23  ;;  %2342 = vrcp.f32 %v3488_v16  ;;  %v1320_v49 = vmul.f32 %v1049_v3, %v4025_v54  ;;  %v2012_v36 = vmul.f32 -1.442695, %v4026_v37  ;;  %v4030_v31 = vld [vmem:[#allocation24_spill] sm:$0xff] }
 0x15a   : > { %v1130_v0 = vadd.f32 %v3048_v58, %v3250_v60  ;;  %vm1147_vm3 = vweird.f32 %v3057_v29  ;;  %v1034_v12 = vsel %vm1031_vm2, %v1033_v43, %v1029_v40  ;;  %2344 = vpow2.f32 %v3407_v26  ;;  %v4040_v43 = vld [vmem:[#allocation23_spill] sm:$0xff] }
 0x15b   : > { %v629_v34 = vpop.f32.mrf.mxu2  ;;  %v4027_v44 = vand.u32 2147483647, %v4018_v8  ;;  %v1318_v11 = vmul.f32 %v1019_v10, %v4030_v31  ;;  %v1321_v56 = vmul.f32 %v1064_v38, %v4031_v15  ;;  %v2013_v47 = vmul.f32 -1.442695, %v4032_v51  ;;  %vm3591_vm8 = vmor %vm1146_vm1, %vm1147_vm3  ;;  %v4049_v8 = vld [vmem:[#allocation9_spill] sm:$0xff] }
 0x15c   : > { %v678_v19 = vpop.f32.mrf.mxu3  ;;  %v1352_v4 = vmul.f32 %v1320_v49, %v3427_v62  ;;  %v3547_v60 = vpop.eup %2336  ;;  %v1145_v18 = vadd.f32 %v3057_v29, %v3259_v50  ;;  %v4033_v26 = vand.u32 2147483647, %v2971_v63  ;;  %v1159_v9 = vmul.f32 %v3288_v35, %v1158_v52 }
 0x15d   : > { %vm3539_vm4 = vcmp.eq.f32.partialorder %v4027_v44, 8.507059e+37  ;;  %v1174_v30 = vmul.f32 %v3431_v42, %v1173_v1  ;;  %2346 = vpow2.f32 %v2011_v2  ;;  %v3559_v41 = vpop.eup %2338  ;;  %v1319_v62 = vmul.f32 %v1034_v12, %v4036_v6 }
 0x15e   : > { %vm3553_vm5 = vcmp.eq.f32.partialorder %v4033_v26, 8.507059e+37  ;;  %2348 = vpow2.f32 %v2012_v36  ;;  %v1350_v46 = vmul.f32 %v1318_v11, %v3390_v24  ;;  %v1353_v50 = vmul.f32 %v1321_v56, %v3429_v25  ;;  %v3564_v14 = vpop.eup %2340  ;;  %v4041_v24 = vld [vmem:[#allocation26_spill] sm:$0xff]  ;;  %v4044_v11 = vld [vmem:[#allocation27_spill] sm:$0xff] }
 0x15f   : > { %v3575_v52 = vmul.f32 %v4039_v45, %v629_v34  ;;  %v3578_v3 = vmul.f32 %v4040_v43, %v678_v19  ;;  %v3585_v40 = vpop.eup %2342  ;;  %v1153_v34 = vor.u32 1.1754944e-38, %v1152_v39  ;;  %2350 = vpow2.f32 %v2013_v47 }
 0x160   : > { %v1351_v19 = vmul.f32 %v1319_v62, %v3392_v53  ;;  %v1392_v10 = vpack.c.bf16 %v1352_v4, %v1350_v46  ;;  %v2345_v2 = vpop.eup %2344  ;;  %v1134_v38 = vsel %vm3570_vm6, %v3048_v58, %v1130_v0  ;;  %v1149_v23 = vsel %vm3591_vm8, %v3057_v29, %v1145_v18 }
 0x161   : > { %v1160_v39 = vadd.f32 %v3288_v35, %v1159_v9  ;;  %vm1162_vm7 = vweird.f32 %v3288_v35  ;;  %v1165_v53 = vand.u32 2147483647, %v3205_v5  ;;  %v1167_v58 = vand.u32 2147483648, %v3205_v5 }
 0x162   : > { %v1393_v54 = vpack.c.bf16 %v1353_v50, %v1351_v19  ;;  %v1175_v36 = vadd.f32 %v3431_v42, %v1174_v30  ;;  %vm1177_vm9 = vweird.f32 %v3431_v42  ;;  %v1180_v29 = vand.u32 2147483647, %v3339_v27  ;;  %1553 = vmatmul.bf16.gmra.mxu0 %v1392_v10  ;;  %v4050_v19 = vld [vmem:[#allocation10_spill] sm:$0xff]  ;;  %v4051_v10 = vld [vmem:[#allocation11_spill] sm:$0xff] }
 0x163   : > { %v631_v59 = vpop.f32.mrf.mxu2  ;;  %v2347_v49 = vpop.eup %2346  ;;  %vm1161_vm10 = vweird.f32 %v3205_v5  ;;  %v1182_v12 = vand.u32 2147483648, %v3339_v27  ;;  %v1187_v44 = vmul.f32 %v3547_v60, %v3410_v61  ;;  %v1202_v31 = vmul.f32 %v3559_v41, %v3465_v32 }
 0x164   : > { %v680_v17 = vpop.f32.mrf.mxu3  ;;  %v3581_v25 = vmul.f32 %v4041_v24, %v631_v59  ;;  %v2349_v0 = vpop.eup %2348  ;;  %v1139_v15 = vsel %vm3539_vm4, %v4044_v11, %v1134_v38  ;;  %vm3626_vm11 = vmor %vm1161_vm10, %vm1162_vm7  ;;  %vm1176_vm12 = vweird.f32 %v3339_v27  ;;  %v1217_v5 = vmul.f32 %v3564_v14, %v3486_v13  ;;  %1602 = vmatmul.bf16.gmra.mxu1 %v1393_v54 }
 0x165   : > { %v3583_v1 = vmul.f32 %v1325_v28, %v680_v17  ;;  %v1232_v47 = vmul.f32 %v3585_v40, %v3488_v16  ;;  %v2351_v4 = vpop.eup %2350  ;;  %v1154_v18 = vsel %vm3553_vm5, %v1153_v34, %v1149_v23  ;;  %v1164_v20 = vsel %vm3626_vm11, %v3288_v35, %v1160_v39  ;;  %vm3642_vm14 = vmor %vm1176_vm12, %vm1177_vm9  ;;  %v4052_v39 = vld [vmem:[#allocation12_spill] sm:$0xff] }
 0x166   : > { %v1394_v28 = vpack.c.bf16 %v3581_v25, %v3575_v52  ;;  %vm1166_vm13 = vcmp.eq.f32.partialorder %v1165_v53, 8.507059e+37  ;;  %v3646_v27 = vadd.f32 1.0, %v2345_v2  ;;  %v1168_v6 = vor.u32 1.1754944e-38, %v1167_v58 }
 0x167   : > { %v1395_v63 = vpack.c.bf16 %v3583_v1, %v3578_v3  ;;  %v1179_v48 = vsel %vm3642_vm14, %v3431_v42, %v1175_v36  ;;  %vm1181_vm15 = vcmp.eq.f32.partialorder %v1180_v29, 8.507059e+37  ;;  %v3651_v62 = vadd.f32 1.0, %v2347_v49  ;;  %v4061_v3 = vld [vmem:[#allocation13_spill] sm:$0xff] }
 0x168   : > { %v1183_v35 = vor.u32 1.1754944e-38, %v1182_v12  ;;  %v1188_v46 = vsub.f32 1.0, %v1187_v44  ;;  %v1203_v50 = vsub.f32 1.0, %v1202_v31  ;;  %v3653_v59 = vadd.f32 1.0, %v2349_v0 }
 0x169   : > { %v1169_v17 = vsel %vm1166_vm13, %v1168_v6, %v1164_v20  ;;  %v1218_v57 = vsub.f32 1.0, %v1217_v5  ;;  %v1233_v45 = vsub.f32 1.0, %v1232_v47  ;;  %v3655_v43 = vadd.f32 1.0, %v2351_v4 }
 0x16a   : > { %v1184_v24 = vsel %vm1181_vm15, %v1183_v35, %v1179_v48  ;;  %2352 = vrcp.f32 %v3646_v27  ;;  %v1326_v34 = vmul.f32 %v1139_v15, %v4049_v8  ;;  %v1327_v42 = vmul.f32 %v1154_v18, %v4050_v19 }
 0x16b   : > { %v634_v9 = vpop.f32.mrf.mxu2  ;;  %2354 = vrcp.f32 %v3651_v62  ;;  %v1328_v2 = vmul.f32 %v1169_v17, %v4051_v10  ;;  %v1189_v38 = vmul.f32 %v3547_v60, %v1188_v46  ;;  %v1204_v23 = vmul.f32 %v3559_v41, %v1203_v50 }
 0x16c   : > { %v683_v30 = vpop.f32.mrf.mxu3  ;;  %2356 = vrcp.f32 %v3653_v59  ;;  %v1329_v53 = vmul.f32 %v1184_v24, %v4052_v39  ;;  %v1219_v54 = vmul.f32 %v3564_v14, %v1218_v57  ;;  %v1234_v49 = vmul.f32 %v3585_v40, %v1233_v45 }
 0x16d   : > { %2358 = vrcp.f32 %v3655_v43  ;;  %vm1191_vm0 = vweird.f32 %v3410_v61  ;;  %vm1192_vm1 = vweird.f32 %v3547_v60  ;;  %vm1206_vm2 = vweird.f32 %v3465_v32 }
 0x16e   : > { %vm1207_vm3 = vweird.f32 %v3559_v41  ;;  %v3673_v29 = vmul.f32 %v1326_v34, %v634_v9  ;;  %v3675_v0 = vmul.f32 %v1327_v42, %v683_v30  ;;  %v1190_v11 = vadd.f32 %v3547_v60, %v1189_v38  ;;  %vm3693_vm6 = vmor %vm1191_vm0, %vm1192_vm1 }
 0x16f   : > { %v1205_v15 = vadd.f32 %v3559_v41, %v1204_v23  ;;  %vm1222_vm4 = vweird.f32 %v3564_v14  ;;  %vm1237_vm5 = vweird.f32 %v3585_v40  ;;  %v1220_v47 = vadd.f32 %v3564_v14, %v1219_v54  ;;  %vm3711_vm8 = vmor %vm1206_vm2, %vm1207_vm3 }
 0x170   : > { %v3681_v31 = vpop.eup %2352  ;;  %v1235_v4 = vadd.f32 %v3585_v40, %v1234_v49  ;;  %v1195_v9 = vand.u32 2147483647, %v3410_v61  ;;  %v1197_v30 = vand.u32 2147483648, %v3410_v61  ;;  %vm1221_vm7 = vweird.f32 %v3486_v13 }
 0x171   : > { %v3687_v56 = vpop.eup %2354  ;;  %v1212_v35 = vand.u32 2147483648, %v3465_v32  ;;  %vm3721_vm9 = vmor %vm1221_vm7, %vm1222_vm4  ;;  %v1227_v61 = vand.u32 2147483648, %v3486_v13  ;;  %vm1236_vm10 = vweird.f32 %v3488_v16  ;;  %v1242_v50 = vand.u32 2147483648, %v3488_v16 }
 0x172   : > { %v3703_v26 = vpop.eup %2356  ;;  %v1210_v17 = vand.u32 2147483647, %v3465_v32  ;;  %v1225_v57 = vand.u32 2147483647, %v3486_v13  ;;  %vm3732_vm11 = vmor %vm1236_vm10, %vm1237_vm5  ;;  %v1240_v24 = vand.u32 2147483647, %v3488_v16  ;;  %1558 = vmatmul.bf16.gmra.mxu0 %v1394_v28  ;;  %v1194_v8 = vsel %vm3693_vm6, %v3547_v60, %v1190_v11 }
 0x173   : > { %v636_v58 = vpop.f32.mrf.mxu2  ;;  %v3716_v48 = vpop.eup %2358  ;;  %v1209_v32 = vsel %vm3711_vm8, %v3559_v41, %v1205_v15  ;;  %v1224_v13 = vsel %vm3721_vm9, %v3564_v14, %v1220_v47  ;;  %v1239_v16 = vsel %vm3732_vm11, %v3585_v40, %v1235_v4  ;;  %v1247_v52 = vmul.f32 %v3681_v31, %v3646_v27 }
 0x174   : > { %v685_v36 = vpop.f32.mrf.mxu3  ;;  %v3677_v12 = vmul.f32 %v1328_v2, %v636_v58  ;;  %v1262_v25 = vmul.f32 %v3687_v56, %v3651_v62  ;;  %v1277_v60 = vmul.f32 %v3703_v26, %v3653_v59  ;;  %v1292_v41 = vmul.f32 %v3716_v48, %v3655_v43  ;;  %1607 = vmatmul.bf16.gmra.mxu1 %v1395_v63 }
 0x175   : > { %v3679_v44 = vmul.f32 %v1329_v53, %v685_v36  ;;  %v1198_v34 = vor.u32 1.1754944e-38, %v1197_v30  ;;  %v1213_v40 = vor.u32 1.1754944e-38, %v1212_v35  ;;  %v1228_v19 = vor.u32 1.1754944e-38, %v1227_v61 }
 0x176   : > { %v1396_v18 = vpack.c.bf16 %v3677_v12, %v3673_v29  ;;  %v1243_v42 = vor.u32 1.1754944e-38, %v1242_v50  ;;  %vm1196_vm12 = vcmp.eq.f32.partialorder %v1195_v9, 8.507059e+37  ;;  %vm1211_vm13 = vcmp.eq.f32.partialorder %v1210_v17, 8.507059e+37 }
 0x177   : > { %v1397_v20 = vpack.c.bf16 %v3679_v44, %v3675_v0  ;;  %vm1226_vm14 = vcmp.eq.f32.partialorder %v1225_v57, 8.507059e+37  ;;  %vm1241_vm15 = vcmp.eq.f32.partialorder %v1240_v24, 8.507059e+37  ;;  %v1199_v10 = vsel %vm1196_vm12, %v1198_v34, %v1194_v8 }
 0x178   : > { %v1214_v2 = vsel %vm1211_vm13, %v1213_v40, %v1209_v32  ;;  %v1229_v38 = vsel %vm1226_vm14, %v1228_v19, %v1224_v13  ;;  %v1244_v23 = vsel %vm1241_vm15, %v1243_v42, %v1239_v16  ;;  %v1248_v39 = vsub.f32 1.0, %v1247_v52 }
 0x179   : > { %v1263_v53 = vsub.f32 1.0, %v1262_v25  ;;  %v1278_v54 = vsub.f32 1.0, %v1277_v60  ;;  %v1293_v49 = vsub.f32 1.0, %v1292_v41  ;;  %v1330_v1 = vmul.f32 %v1199_v10, %v4061_v3 }
 0x17a   : > { %v1331_v63 = vmul.f32 %v1214_v2, %v2699_v7  ;;  %v1332_v58 = vmul.f32 %v1229_v38, %v2721_v21  ;;  %v1333_v36 = vmul.f32 %v1244_v23, %v2723_v22  ;;  %v1249_v11 = vmul.f32 %v3681_v31, %v1248_v39 }
 0x17b   : > { %v639_v14 = vpop.f32.mrf.mxu2  ;;  %v1264_v15 = vmul.f32 %v3687_v56, %v1263_v53  ;;  %v1279_v5 = vmul.f32 %v3703_v26, %v1278_v54  ;;  %v1294_v47 = vmul.f32 %v3716_v48, %v1293_v49  ;;  %vm1251_vm0 = vweird.f32 %v3646_v27 }
 0x17c   : > { %v688_v28 = vpop.f32.mrf.mxu3  ;;  %v1362_v30 = vmul.f32 %v1330_v1, %v639_v14  ;;  %vm1252_vm1 = vweird.f32 %v3681_v31  ;;  %v1255_v7 = vand.u32 2147483647, %v3646_v27  ;;  %vm1267_vm2 = vweird.f32 %v3687_v56 }
 0x17d   : > { %v1363_v6 = vmul.f32 %v1331_v63, %v688_v28  ;;  %v1250_v61 = vadd.f32 %v3681_v31, %v1249_v11  ;;  %v1257_v50 = vand.u32 2147483648, %v3646_v27  ;;  %vm1266_vm3 = vweird.f32 %v3651_v62  ;;  %vm3779_vm5 = vmor %vm1251_vm0, %vm1252_vm1 }
 0x17e   : > { %vm1282_vm4 = vweird.f32 %v3703_v26  ;;  %v1265_v57 = vadd.f32 %v3687_v56, %v1264_v15  ;;  %v1280_v45 = vadd.f32 %v3703_v26, %v1279_v5  ;;  %v1295_v24 = vadd.f32 %v3716_v48, %v1294_v47  ;;  %vm3787_vm8 = vmor %vm1266_vm3, %vm1267_vm2  ;;  %v1372_v15 = vld [vmem:[#allocation2 + $0x58] sm:$0xff] }
 0x17f   : > { %vm1297_vm6 = vweird.f32 %v3716_v48  ;;  %v1272_v27 = vand.u32 2147483648, %v3651_v62  ;;  %vm1281_vm7 = vweird.f32 %v3653_v59  ;;  %v1287_v32 = vand.u32 2147483648, %v3653_v59 }
 0x180   : > { %v1302_v13 = vand.u32 2147483648, %v3655_v43  ;;  %v1270_v16 = vand.u32 2147483647, %v3651_v62  ;;  %vm3799_vm9 = vmor %vm1281_vm7, %vm1282_vm4  ;;  %v1285_v25 = vand.u32 2147483647, %v3653_v59  ;;  %vm1296_vm10 = vweird.f32 %v3655_v43 }
 0x181   : > { %v1300_v60 = vand.u32 2147483647, %v3655_v43  ;;  %vm3806_vm11 = vmor %vm1296_vm10, %vm1297_vm6  ;;  %v1254_v12 = vsel %vm3779_vm5, %v3681_v31, %v1250_v61  ;;  %v1269_v59 = vsel %vm3787_vm8, %v3687_v56, %v1265_v57  ;;  %v1284_v43 = vsel %vm3799_vm9, %v3703_v26, %v1280_v45  ;;  %v1375_v57 = vld [vmem:[#allocation2 + $0x68] sm:$0xff] }
 0x182   : > { %1563 = vmatmul.bf16.gmra.mxu0 %v1396_v18  ;;  %v1299_v18 = vsel %vm3806_vm11, %v3716_v48, %v1295_v24  ;;  %v1258_v0 = vor.u32 1.1754944e-38, %v1257_v50  ;;  %v1273_v44 = vor.u32 1.1754944e-38, %v1272_v27  ;;  %v1303_v14 = vor.u32 1.1754944e-38, %v1302_v13 }
 0x183   : > { %v641_v4 = vpop.f32.mrf.mxu2  ;;  %vm1256_vm12 = vcmp.eq.f32.partialorder %v1255_v7, 8.507059e+37  ;;  %vm1271_vm13 = vcmp.eq.f32.partialorder %v1270_v16, 8.507059e+37  ;;  %vm1286_vm14 = vcmp.eq.f32.partialorder %v1285_v25, 8.507059e+37  ;;  %vm1301_vm15 = vcmp.eq.f32.partialorder %v1300_v60, 8.507059e+37  ;;  %v1377_v60 = vld [vmem:[#allocation2 + $0x48] sm:$0xff] }
 0x184   : > { %v690_v9 = vpop.f32.mrf.mxu3  ;;  %v1364_v35 = vmul.f32 %v1332_v58, %v641_v4  ;;  %1612 = vmatmul.bf16.gmra.mxu1 %v1397_v20  ;;  %v1288_v20 = vor.u32 1.1754944e-38, %v1287_v32  ;;  %v1259_v31 = vsel %vm1256_vm12, %v1258_v0, %v1254_v12  ;;  %v1274_v28 = vsel %vm1271_vm13, %v1273_v44, %v1269_v59  ;;  %v1376_v32 = vld [vmem:[#allocation2 + $0x8] sm:$0xff]  ;;  %v1378_v59 = vld [vmem:[#allocation2 + $0x40] sm:$0xff] }
 0x185   : > { %v1365_v46 = vmul.f32 %v1333_v36, %v690_v9  ;;  %v1304_v56 = vsel %vm1301_vm15, %v1303_v14, %v1299_v18  ;;  %v1334_v40 = vmul.f32 %v1259_v31, %v2764_v55  ;;  %v1335_v26 = vmul.f32 %v1274_v28, %v4023_v33  ;;  %v1370_v55 = vld [vmem:[#allocation2 + $0x30] sm:$0xff] }
 0x186   : > { %v1398_v21 = vpack.c.bf16 %v1364_v35, %v1362_v30  ;;  %v1289_v34 = vsel %vm1286_vm14, %v1288_v20, %v1284_v43  ;;  %v1337_v48 = vmul.f32 %v1304_v56, %v4032_v51  ;;  %v1371_v51 = vld [vmem:[#allocation2] sm:$0xff]  ;;  %v1373_v30 = vld [vmem:[#allocation2 + $0x18] sm:$0xff]  ;;  %v1380_v56 = vld [vmem:[#allocation2 + $0x10] sm:$0xff] }
 0x187   : > { %v1399_v22 = vpack.c.bf16 %v1365_v46, %v1363_v6  ;;  %v1336_v19 = vmul.f32 %v1289_v34, %v4026_v37  ;;  %v1379_v20 = vld [vmem:[#allocation2 + $0x20] sm:$0xff] }
 0x18b   : > { %v644_v29 = vpop.f32.mrf.mxu2 }
 0x18c   : > { %v693_v62 = vpop.f32.mrf.mxu3  ;;  %v1366_v2 = vmul.f32 %v1334_v40, %v644_v29 }
 0x18d   : > { %v1367_v38 = vmul.f32 %v1335_v26, %v693_v62 }
 0x192   : > { %1568 = vmatmul.bf16.gmra.mxu0 %v1398_v21  ;;  %v1374_v21 = vld [vmem:[#allocation2 + $0x50] sm:$0xff] }
 0x193   : > { %v646_v42 = vpop.f32.mrf.mxu2 }
 0x194   : > { %v695_v10 = vpop.f32.mrf.mxu3  ;;  %v1368_v23 = vmul.f32 %v1336_v19, %v646_v42  ;;  %1617 = vmatmul.bf16.gmra.mxu1 %v1399_v22  ;;  %v1381_v42 = vld [vmem:[#allocation2 + $0x38] sm:$0xff] }
 0x195   : > { %v1369_v39 = vmul.f32 %v1337_v48, %v695_v10 }
 0x196   : > { %v1400_v53 = vpack.c.bf16 %v1368_v23, %v1366_v2 }
 0x197   : > { %v1401_v54 = vpack.c.bf16 %v1369_v39, %v1367_v38  ;;  %v1382_v39 = vld [vmem:[#allocation2 + $0x60] sm:$0xff] }
 0x1a2   : > { %1573 = vmatmul.bf16.gmra.mxu0 %v1400_v53 }
 0x1a4   : > { %1622 = vmatmul.bf16.gmra.mxu1 %v1401_v54 }
 0x1af   : > { %v1539_v49 = vpop.f32.mrf.mxu0 }
 0x1b1   : > { %v1588_v3 = vpop.f32.mrf.mxu1 }
 0x1b2   : > { %v1589_v33 = vadd.f32 %v1588_v3, %v1539_v49  ;;  %v1383_v3 = vld [vmem:[#allocation2 + $0x70] sm:$0xff] }
 0x1b4   : > { %v1628_v1 = vadd.f32 %v1589_v33, %v1370_v55 }
 0x1b6   : > { %1644 = vst [vmem:[#allocation2 + $0x30] sm:$0xff] %v1628_v1 }
 0x1b7   : > { %v1541_v37 = vpop.f32.mrf.mxu0 }
 0x1b9   : > { %v1590_v63 = vpop.f32.mrf.mxu1 }
 0x1ba   : > { %v1591_v58 = vadd.f32 %v1590_v63, %v1541_v37  ;;  %v1384_v63 = vld [vmem:[#allocation2 + $0x78] sm:$0xff] }
 0x1bc   : > { %v1629_v36 = vadd.f32 %v1591_v58, %v1371_v51 }
 0x1be   : > { %1645 = vst [vmem:[#allocation2] sm:$0xff] %v1629_v36 }
 0x1bf   : > { %v1544_v11 = vpop.f32.mrf.mxu0 }
 0x1c1   : > { %v1593_v5 = vpop.f32.mrf.mxu1 }
 0x1c2   : > { %v1594_v47 = vadd.f32 %v1593_v5, %v1544_v11  ;;  %v1385_v5 = vld [vmem:[#allocation2 + $0x28] sm:$0xff] }
 0x1c4   : > { %v1630_v4 = vadd.f32 %v1594_v47, %v1372_v15 }
 0x1c6   : > { %1646 = vst [vmem:[#allocation2 + $0x58] sm:$0xff] %v1630_v4 }
 0x1c7   : > { %v1546_v9 = vpop.f32.mrf.mxu0 }
 0x1c9   : > { %v1595_v6 = vpop.f32.mrf.mxu1 }
 0x1ca   : > { %v1596_v35 = vadd.f32 %v1595_v6, %v1546_v9 }
 0x1cc   : > { %v1631_v46 = vadd.f32 %v1596_v35, %v1373_v30 }
 0x1ce   : > { %1647 = vst [vmem:[#allocation2 + $0x18] sm:$0xff] %v1631_v46 }
 0x1cf   : > { %v1549_v7 = vpop.f32.mrf.mxu0 }
 0x1d1   : > { %v1598_v22 = vpop.f32.mrf.mxu1 }
 0x1d2   : > { %v1599_v61 = vadd.f32 %v1598_v22, %v1549_v7 }
 0x1d4   : > { %v1632_v50 = vadd.f32 %v1599_v61, %v1374_v21 }
 0x1d6   : > { %1648 = vst [vmem:[#allocation2 + $0x50] sm:$0xff] %v1632_v50 }
 0x1d7   : > { %v1551_v17 = vpop.f32.mrf.mxu0 }
 0x1d9   : > { %v1600_v45 = vpop.f32.mrf.mxu1 }
 0x1da   : > { %v1601_v24 = vadd.f32 %v1600_v45, %v1551_v17 }
 0x1dc   : > { %v1633_v8 = vadd.f32 %v1601_v24, %v1375_v57 }
 0x1de   : > { %1649 = vst [vmem:[#allocation2 + $0x68] sm:$0xff] %v1633_v8 }
 0x1df   : > { %v1554_v27 = vpop.f32.mrf.mxu0 }
 0x1e1   : > { %v1603_v13 = vpop.f32.mrf.mxu1 }
 0x1e2   : > { %v1604_v16 = vadd.f32 %v1603_v13, %v1554_v27 }
 0x1e4   : > { %v1634_v52 = vadd.f32 %v1604_v16, %v1376_v32 }
 0x1e6   : > { %1650 = vst [vmem:[#allocation2 + $0x8] sm:$0xff] %v1634_v52 }
 0x1e7   : > { %v1556_v25 = vpop.f32.mrf.mxu0 }
 0x1e9   : > { %v1605_v41 = vpop.f32.mrf.mxu1 }
 0x1ea   : > { %v1606_v29 = vadd.f32 %v1605_v41, %v1556_v25 }
 0x1ec   : > { %v1635_v62 = vadd.f32 %v1606_v29, %v1377_v60 }
 0x1ee   : > { %1651 = vst [vmem:[#allocation2 + $0x48] sm:$0xff] %v1635_v62 }
 0x1ef   : > { %v1559_v12 = vpop.f32.mrf.mxu0 }
 0x1f1   : > { %v1608_v43 = vpop.f32.mrf.mxu1 }
 0x1f2   : > { %v1609_v18 = vadd.f32 %v1608_v43, %v1559_v12 }
 0x1f4   : > { %v1636_v0 = vadd.f32 %v1609_v18, %v1378_v59 }
 0x1f6   : > { %1652 = vst [vmem:[#allocation2 + $0x40] sm:$0xff] %v1636_v0 }
 0x1f7   : > { %v1561_v44 = vpop.f32.mrf.mxu0 }
 0x1f9   : > { %v1610_v14 = vpop.f32.mrf.mxu1 }
 0x1fa   : > { %v1611_v31 = vadd.f32 %v1610_v14, %v1561_v44 }
 0x1fc   : > { %v1637_v28 = vadd.f32 %v1611_v31, %v1379_v20 }
 0x1fe   : > { %1653 = vst [vmem:[#allocation2 + $0x20] sm:$0xff] %v1637_v28 }
 0x1ff   : > { %v1564_v34 = vpop.f32.mrf.mxu0 }
 0x201   : > { %v1613_v40 = vpop.f32.mrf.mxu1 }
 0x202   : > { %v1614_v26 = vadd.f32 %v1613_v40, %v1564_v34 }
 0x204   : > { %v1638_v19 = vadd.f32 %v1614_v26, %v1380_v56 }
 0x206   : > { %1654 = vst [vmem:[#allocation2 + $0x10] sm:$0xff] %v1638_v19 }
 0x207   : > { %v1566_v48 = vpop.f32.mrf.mxu0 }
 0x209   : > { %v1615_v10 = vpop.f32.mrf.mxu1 }
 0x20a   : > { %v1616_v2 = vadd.f32 %v1615_v10, %v1566_v48 }
 0x20c   : > { %v1639_v38 = vadd.f32 %v1616_v2, %v1381_v42 }
 0x20e   : > { %1655 = vst [vmem:[#allocation2 + $0x38] sm:$0xff] %v1639_v38 }
 0x20f   : > { %v1569_v23 = vpop.f32.mrf.mxu0 }
 0x211   : > { %v1618_v53 = vpop.f32.mrf.mxu1 }
 0x212   : > { %v1619_v54 = vadd.f32 %v1618_v53, %v1569_v23 }
 0x214   : > { %v1640_v49 = vadd.f32 %v1619_v54, %v1382_v39 }
 0x216   : > { %1656 = vst [vmem:[#allocation2 + $0x60] sm:$0xff] %v1640_v49 }
 0x217   : > { %v1571_v55 = vpop.f32.mrf.mxu0 }
 0x219   : > { %v1620_v33 = vpop.f32.mrf.mxu1 }
 0x21a   : > { %v1621_v1 = vadd.f32 %v1620_v33, %v1571_v55 }
 0x21c   : > { %v1641_v37 = vadd.f32 %v1621_v1, %v1383_v3 }
 0x21e   : > { %1657 = vst [vmem:[#allocation2 + $0x70] sm:$0xff] %v1641_v37 }
 0x21f   : > { %v1574_v51 = vpop.f32.mrf.mxu0 }
 0x221   : > { %v1623_v58 = vpop.f32.mrf.mxu1 }
 0x222   : > { %v1624_v36 = vadd.f32 %v1623_v58, %v1574_v51 }
 0x224   : > { %v1642_v11 = vadd.f32 %v1624_v36, %v1384_v63 }
 0x226   : > { %1658 = vst [vmem:[#allocation2 + $0x78] sm:$0xff] %v1642_v11 }
 0x227   : > { %v1576_v15 = vpop.f32.mrf.mxu0 }
 0x229   : > { %v1625_v47 = vpop.f32.mrf.mxu1 }
 0x22a   : > { %v1626_v4 = vadd.f32 %v1625_v47, %v1576_v15  ;;  %1663 = sbr.rel (%p2078_p2) target bundleno = 576 (0x240), region = 40 }
 0x22c   : > { %v1643_v9 = vadd.f32 %v1626_v4, %v1385_v5 }
 0x22e   : > { %1659 = vst [vmem:[#allocation2 + $0x28] sm:$0xff] %v1643_v9 }
 0x22f   : > { %v1664_v30 = vld [vmem:[#allocation2 + $0x30] sm:$0xff]  ;;  %v1665_v6 = vld [vmem:[#allocation2] sm:$0xff]  ;;  %v1666_v35 = vld [vmem:[#allocation2 + $0x58] sm:$0xff] }
 0x230   : > { %1680 = vst [vmem:[%s2570_s30] sm:$0xff] %v1664_v30  ;;  %v1667_v46 = vld [vmem:[#allocation2 + $0x18] sm:$0xff]  ;;  %v1668_v7 = vld [vmem:[#allocation2 + $0x50] sm:$0xff]  ;;  %v1669_v21 = vld [vmem:[#allocation2 + $0x68] sm:$0xff] }
 0x231   : > { %1681 = vst [vmem:[%s2570_s30 + $0x8] sm:$0xff] %v1665_v6  ;;  %v1670_v22 = vld [vmem:[#allocation2 + $0x8] sm:$0xff]  ;;  %v1672_v50 = vld [vmem:[#allocation2 + $0x40] sm:$0xff]  ;;  %v1674_v57 = vld [vmem:[#allocation2 + $0x10] sm:$0xff] }
 0x232   : > { %1682 = vst [vmem:[%s2570_s30 + $0x10] sm:$0xff] %v1666_v35  ;;  %v1671_v61 = vld [vmem:[#allocation2 + $0x48] sm:$0xff]  ;;  %v1673_v17 = vld [vmem:[#allocation2 + $0x20] sm:$0xff]  ;;  %v1675_v45 = vld [vmem:[#allocation2 + $0x38] sm:$0xff] }
 0x233   : > { %1683 = vst [vmem:[%s2570_s30 + $0x18] sm:$0xff] %v1667_v46  ;;  %v1676_v24 = vld [vmem:[#allocation2 + $0x60] sm:$0xff]  ;;  %v1677_v8 = vld [vmem:[#allocation2 + $0x70] sm:$0xff]  ;;  %v1678_v27 = vld [vmem:[#allocation2 + $0x78] sm:$0xff] }
 0x234   : > { %1684 = vst [vmem:[%s2570_s30 + $0x20] sm:$0xff] %v1668_v7 }
 0x235   : > { %1685 = vst [vmem:[%s2570_s30 + $0x28] sm:$0xff] %v1669_v21  ;;  %v1679_v32 = vld [vmem:[#allocation2 + $0x28] sm:$0xff] }
 0x236   : > { %1686 = vst [vmem:[%s2570_s30 + $0x30] sm:$0xff] %v1670_v22 }
 0x237   : > { %1687 = vst [vmem:[%s2570_s30 + $0x38] sm:$0xff] %v1671_v61 }
 0x238   : > { %1688 = vst [vmem:[%s2570_s30 + $0x40] sm:$0xff] %v1672_v50 }
 0x239   : > { %1689 = vst [vmem:[%s2570_s30 + $0x48] sm:$0xff] %v1673_v17 }
 0x23a   : > { %1690 = vst [vmem:[%s2570_s30 + $0x50] sm:$0xff] %v1674_v57 }
 0x23b   : > { %1691 = vst [vmem:[%s2570_s30 + $0x58] sm:$0xff] %v1675_v45 }
 0x23c   : > { %1692 = vst [vmem:[%s2570_s30 + $0x60] sm:$0xff] %v1676_v24 }
 0x23d   : > { %1693 = vst [vmem:[%s2570_s30 + $0x68] sm:$0xff] %v1677_v8 }
 0x23e   : > { %1694 = vst [vmem:[%s2570_s30 + $0x70] sm:$0xff] %v1678_v27 }
 0x23f   : > { %1695 = vst [vmem:[%s2570_s30 + $0x78] sm:$0xff] %v1679_v32 }
 0x240 PF: > { %s2141_s15 = sshll.u32 %s2442_s16, 7  ;;  %s1709_s4 = sshll.u32 %s2570_s30, 4  ;;  %s1710_s4 = int_to_ptr.vmem [resolvable:$true] %s1709_s4 }
 0x241   : > { %s1708_s29 = scalar_lea.hbm %s3894_s3, %s2141_s15  ;;  %s4070_s6 = sand.u32 1, %s2430_s13  }
 0x242   : > { %s1711_s5 = sshll.u32 %s1708_s29, 4  ;;  %s1697_s7 = scalar_lea.sflag [#allocation4], %s4070_s6  ;;  %s1712_s5 = int_to_ptr.hbm [resolvable:$true] %s1711_s5 }
 0x243   : > { %s2374_s8 = sshra.s32 %s1712_s5, 4  ;;  %s2380_s16 = scalar_lea.hbm %s3894_s3, 256  ;;  %s2375_s8 = int_to_ptr.hbm [resolvable:$true] %s2374_s8 }
 0x244   : > { %s2376_s9 = scalar_lea.hbm %s2375_s8, 128  ;;  %p2381_p7 = scmp.lt.s32.totalorder %s2375_s8, %s3894_s3 }
 0x245   : > { %p2377_p4 = scmp.ne.s32.totalorder %s2375_s8, %s2376_s9  ;;  %p2382_p8 = scmp.lt.s32.totalorder %s2380_s16, %s2376_s9 }
 0x247   : > { %p2378_p5 = pnand %p2377_p4, %p2528_p3  ;;  %p2383_p10 = por %p2382_p8, %p2381_p7 }
 0x249   : > { %p2379_p6 = pneg %p2378_p5 }
 0x24b   : > { %p2384_p11 = pnand %p2383_p10, %p2379_p6 }
 0x24d   : > { %2387 = shalt.err (!%p2384_p11)
}
 0x24e   : > { %s2457_s26 = smov 128   ;;  %s2458_s27 = smov 8  }
 0x24f   : > { %2158 = dma.vmem_to_hbm [thread:$0]  (%p2528_p3), %s1710_s4, 2048, %s1712_s5, %s1697_s7, %s2457_s26, %s2457_s26, %s2458_s27  }
 0x250 PF: > { %p2164_p12 = scmp.ge.s32.totalorder %s2454_s19, 2  ;;  %s1726_s30 = sand.u32 1, %s2426_s12  }
 0x251   : > { %s1727_s15 = scalar_lea.sflag [#allocation4], %s1726_s30 }
 0x252   : > { %p2161_p13 = pnand %p2164_p12, %p2538_p9 }
 0x254   : > { %p2162_p0 = pneg %p2161_p13 }
 0x256   : > { %2421 = dma.done.wait (%p2162_p0), %s1727_s15, 2048  }
 0x257   : > { %2423 = vsyncadd (%p2162_p0), %s1727_s15, 4294965248  ;;  %s16_s19 = sadd.s32 1, %s2454_s19   ;;  %s4071_s24 = sld [smem:[#allocation6_spill]] }
 0x258   : > { %p13_p1 = scmp.ge.s32.totalorder %s16_s19, 6   ;;  %s4072_s22 = sld [smem:[#allocation7_spill]] }
 0x259   : > { %s4073_s12 = smov %s2430_s13  ;;  %s4074_s13 = smov %s2434_s14 }
 0x25a   : > { %s4075_s14 = smov %s2546_s28  ;;  %s4076_s15 = smov %s2446_s17 }
 0x25b   : > { %s4077_s16 = smov %s2450_s18  ;;  %15 = sbr.rel (!%p13_p1) target bundleno = 5 (0x5), region = 81 }
 0x25d   : > { %s4078_s17 = smov %s4071_s24 }
 0x25e   : > { %s4079_s18 = smov %s4072_s22 }
 0x260   :  { %1733 = vsyncpa [#allocation4], 1 }
 0x261   :  { %1735 = vsyncpa [#allocation4 + $0x1], 1 }

</bundles_post_ra>
